<compile_context>
chip_gen: v7x
topology: tpu7x:2x2x1
jax: 0.10.0
libtpu: 0.0.40
codegen_flags: <defaults>
</compile_context>

<pallas_src>
import functools

import jax
import jax.numpy as jnp
import numpy as np
from jax import lax
from jax.experimental import pallas as pl
from jax.experimental.pallas import tpu as pltpu

HIDDEN = 32          # original module uses 512; scaled down for the demo
K = 9                # kernel_size
PAD = K // 2
BN_EPS = 1e-5
# TODO(synk): nn.Dropout(p=0.15) is identity in eval mode; training-mode dropout
#             (pltpu.prng_random_bits mask) is not implemented.


def _elu(x):
    # ELU(alpha=1): x if x > 0 else exp(x) - 1  (min() keeps exp finite on the dead branch)
    return jnp.where(x > 0, x, jnp.exp(jnp.minimum(x, 0.0)) - 1.0)


def conv_block_kernel(T_total,
                      x_ref, w1_ref, s1_ref, b1_ref,
                      w2_ref, s2_ref, b2_ref,
                      w3_ref, s3_ref, b3_ref, out_ref):
    # x_ref  : (1, 1, TT+6*PAD, F) f32 -- this tile's input window (zero halo baked in)
    # w1_ref : (K*F, C1)  bf16         -- layer-1 im2col weight slab
    # w2_ref : (K, C1, C2) bf16        -- layer-2 per-tap weights
    # w3_ref : (K, C2, C3) bf16        -- layer-3 per-tap weights
    # sN/bN  : (1, CN) f32             -- folded conv-bias + eval BatchNorm scale/shift
    # out_ref: (1, TT, C3)             -- one output time tile
    TT = out_ref.shape[1]
    H1 = TT + 4 * PAD              # layer-1 output rows needed by this tile
    H2 = TT + 2 * PAD              # layer-2 output rows needed by this tile
    t0 = pl.program_id(1) * TT     # global time index of this tile's first output row

    def epilogue(acc, s_ref, b_ref, first_global, rows):
        h = _elu(acc * s_ref[...] + b_ref[...])
        # Zero rows whose global time index falls outside [0, T): this reproduces
        # the zero time-padding between conv layers of the PyTorch module. Only
        # the first/last time tile ever has such rows; the (rows, 1) mask keeps
        # the VPU cost to a narrow iota/compare plus one broadcast multiply.
        g = first_global + lax.broadcasted_iota(jnp.int32, (rows, 1), 0)
        valid = ((g >= 0) & (g < T_total)).astype(h.dtype)
        return h * valid

    # ---- layer 1: Conv2d(1, C1, (K, F)) as ONE deep-K im2col matmul ----
    xw = x_ref[0, 0].astype(jnp.bfloat16)                               # cast once
    im = jnp.concatenate([xw[k:k + H1, :] for k in range(K)], axis=1)   # (H1, K*F)
    acc1 = jnp.dot(im, w1_ref[...], preferred_element_type=jnp.float32)
    h1 = epilogue(acc1, s1_ref, b1_ref, t0 - 2 * PAD, H1).astype(jnp.bfloat16)

    # ---- layers 2/3: Conv2d(Cin, Cout, (K, 1)) as K shifted MXU dots ----
    def shifted_conv(src, rows, w_ref):
        acc = jnp.dot(src[0:rows, :], w_ref[0], preferred_element_type=jnp.float32)
        for k in range(1, K):
            acc += jnp.dot(src[k:k + rows, :], w_ref[k],
                           preferred_element_type=jnp.float32)
        return acc

    h2 = epilogue(shifted_conv(h1, H2, w2_ref), s2_ref, b2_ref,
                  t0 - PAD, H2).astype(jnp.bfloat16)

    # layer-3 output rows are exactly this tile's rows (all valid) -> no mask.
    out = _elu(shifted_conv(h2, TT, w3_ref) * s3_ref[...] + b3_ref[...])
    out_ref[0] = out.astype(out_ref.dtype)


def _vmem_budget_bytes(TT, F, C1, C2, C3, out_itemsize):
    """Per-tile VMEM estimate (with double-buffer factors) + headroom."""
    win = TT + 6 * PAD
    buf = 0
    buf += 2 * win * F * 4                                # x window, double-buffered
    buf += 2 * TT * C3 * out_itemsize                     # out tile, double-buffered
    buf += 2 * (K * F * C1 + K * C1 * C2 + K * C2 * C3)   # bf16 weights, single-buffered
    buf += 4 * 2 * (C1 + C2 + C3)                         # scale / shift
    buf += (TT + 4 * PAD) * K * F * 2                     # layer-1 im2col slab (bf16)
    buf += (TT + 4 * PAD) * C1 * 6                        # h1 (f32 epilogue + bf16 copy)
    buf += (TT + 2 * PAD) * C2 * 6                        # h2
    buf += TT * C3 * 4                                    # layer-3 accumulator
    # 2x headroom for compiler temporaries/spills; keep under v7x's 64 MiB VMEM.
    return int(min(max(2 * buf, 16 * 1024 * 1024), 56 * 1024 * 1024))


def conv_block_pallas(x, folded_params, *, t_tile=256, out_dtype=jnp.float32):
    """x: (B, T, F) float32 -> (B, T, HIDDEN) (eval-mode ConvBlock).

    out_dtype=jnp.bfloat16 halves the dominant (B, T, HIDDEN) HBM writeback if
    the downstream consumer (GRU / transformer) tolerates it.
    """
    B, T, F = x.shape
    (w1, s1, b1), (w2, s2, b2), (w3, s3, b3) = folded_params
    C1, C2, C3 = w1.shape[1], w2.shape[2], w3.shape[2]

    TT = min(t_tile, T)
    assert TT % 8 == 0 and T % TT == 0, "time axis must tile into multiples of 8"
    n_t = T // TT
    win = TT + 6 * PAD

    # Overlapped per-tile windows of the zero-halo-padded input:
    #   x_tiles[b, t] = x_pad[b, t*TT : t*TT + TT + 6*PAD, :]
    # ~(1 + 6*PAD/TT)x HBM read overhead, but x VMEM residency is O(TT*F) and
    # every tile's window is pipelined independently across the grid.
    x_pad = jnp.pad(x, ((0, 0), (3 * PAD, 3 * PAD), (0, 0)))
    rows = np.arange(n_t)[:, None] * TT + np.arange(win)[None, :]     # (n_t, win)
    x_tiles = x_pad[:, rows, :]                                       # (B, n_t, win, F)

    def wspec(arr):
        nd = arr.ndim
        # Grid-invariant operand: single-buffer it (its block index never changes).
        return pl.BlockSpec(arr.shape, lambda b, t: (0,) * nd,
                            pipeline_mode=pl.Buffered(1))

    grid_spec = pltpu.PrefetchScalarGridSpec(
        num_scalar_prefetch=0,
        grid=(B, n_t),
        in_specs=[
            pl.BlockSpec((1, 1, win, F), lambda b, t: (b, t, 0, 0)),
            wspec(w1), wspec(s1), wspec(b1),
            wspec(w2), wspec(s2), wspec(b2),
            wspec(w3), wspec(s3), wspec(b3),
        ],
        out_specs=pl.BlockSpec((1, TT, C3), lambda b, t: (b, t, 0)),
    )
    kernel = functools.partial(conv_block_kernel, T)
    return pl.pallas_call(
        kernel,
        out_shape=jax.ShapeDtypeStruct((B, T, C3), out_dtype),
        grid_spec=grid_spec,
        compiler_params=pltpu.CompilerParams(
            # Both grid axes are independent; keep B*n_t reasonably large/even so
            # v7x's two TensorCores both get work (don't over-grow TT at small B).
            dimension_semantics=("parallel", "parallel"),
            vmem_limit_bytes=_vmem_budget_bytes(
                TT, F, C1, C2, C3, jnp.dtype(out_dtype).itemsize)),
    )(x_tiles, w1, s1, b1, w2, s2, b2, w3, s3, b3)


# ----------------------------------------------------------------------------
# Deterministic parameter construction (PyTorch-shaped), BN folding, reference.
# ----------------------------------------------------------------------------
def make_params(key, in_features):
    C1, C2, C3 = HIDDEN // 4, HIDDEN // 2, HIDDEN
    ks = jax.random.split(key, 12)
    def conv_w(k, shape, fan_in):
        return jax.random.normal(k, shape, jnp.float32) * (1.0 / np.sqrt(fan_in))
    layers = []
    # torch weight layout: (Cout, Cin, KH, KW)
    specs = [((C1, 1, K, in_features), ks[0:4]),
             ((C2, C1, K, 1), ks[4:8]),
             ((C3, C2, K, 1), ks[8:12])]
    for (shape, kk) in specs:
        cout, cin, kh, kw = shape
        w = conv_w(kk[0], shape, cin * kh * kw)
        b = jax.random.normal(kk[1], (cout,), jnp.float32) * 0.1
        gamma = 1.0 + 0.1 * jax.random.normal(kk[2], (cout,), jnp.float32)
        beta = 0.1 * jax.random.normal(kk[3], (cout,), jnp.float32)
        mean = 0.05 * jnp.arange(cout, dtype=jnp.float32) / cout
        var = 1.0 + 0.5 * (jnp.arange(cout, dtype=jnp.float32) / cout)
        layers.append(dict(w=w, b=b, gamma=gamma, beta=beta, mean=mean, var=var))
    return layers


def fold_params(layers):
    """Fold conv bias + eval-mode BatchNorm into per-channel scale/shift and
    build bf16 weight slabs in the layouts the kernel expects:
      layer 1 : (K*F, C1)   im2col columns ordered k*F + f
      layer 2 : (K, C1, C2) per-tap matmul weights
      layer 3 : (K, C2, C3) per-tap matmul weights
    """
    folded = []
    for p in layers:
        w = p["w"]                                  # (Cout, Cin, K, KW)
        cout, cin, kh, kw = w.shape
        if cin == 1:                                # layer 1: feature axis lives on KW
            slab = jnp.transpose(w, (2, 3, 1, 0)).reshape(kh * kw, cout)  # (K*F, Cout)
        else:                                       # layers 2/3: KW == 1
            assert kw == 1
            slab = jnp.transpose(w[:, :, :, 0], (2, 1, 0))                # (K, Cin, Cout)
        scale = p["gamma"] / jnp.sqrt(p["var"] + BN_EPS)
        shift = (p["b"] - p["mean"]) * scale + p["beta"]
        folded.append((slab.astype(jnp.bfloat16),
                       scale.reshape(1, -1).astype(jnp.float32),
                       shift.reshape(1, -1).astype(jnp.float32)))
    return folded


def reference(x, layers):
    """Pure-JAX NCHW reference mirroring the PyTorch module (eval mode)."""
    y = x[:, None, :, :]                                   # (B,1,T,F)
    for p in layers:
        y = lax.conv_general_dilated(
            y, p["w"], window_strides=(1, 1),
            padding=((PAD, PAD), (0, 0)),
            dimension_numbers=("NCHW", "OIHW", "NCHW"),
            precision=lax.Precision.HIGHEST)
        y = y + p["b"][None, :, None, None]
        y = (y - p["mean"][None, :, None, None]) / jnp.sqrt(p["var"][None, :, None, None] + BN_EPS)
        y = y * p["gamma"][None, :, None, None] + p["beta"][None, :, None, None]
        y = jax.nn.elu(y)
        # dropout = identity (eval)
    return jnp.transpose(y[:, :, :, 0], (0, 2, 1))          # (B, T, HIDDEN)


if __name__ == "__main__":
    B, T, F = 2, 32, 16          # small demo; T=32 with t_tile=16 -> 2 time tiles
    key = jax.random.PRNGKey(0)
    kx, kp = jax.random.split(key)
    x = jax.random.normal(kx, (B, T, F), jnp.float32)

    layers = make_params(kp, in_features=F)
    folded = fold_params(layers)

    out = jax.block_until_ready(conv_block_pallas(x, folded, t_tile=16))
    ref = jax.block_until_ready(reference(x, layers))

    assert out.shape == (B, T, HIDDEN), out.shape
    # bf16 MXU operands vs Precision.HIGHEST f32 reference -> ~1e-2 expected error.
    np.testing.assert_allclose(np.asarray(out), np.asarray(ref), rtol=5e-2, atol=5e-2)
    print("KERNEL_OK")
</pallas_src>

<mosaic_0001>
module attributes {stable_mosaic.version = 11 : i64} {
  func.func @conv_block_kernel(%arg0: i32, %arg1: i32, %arg2: memref<1x1x40x16xf32, #tpu.memory_space<vmem>>, %arg3: memref<144x8xbf16, #tpu.memory_space<vmem>>, %arg4: memref<1x8xf32, #tpu.memory_space<vmem>>, %arg5: memref<1x8xf32, #tpu.memory_space<vmem>>, %arg6: memref<9x8x16xbf16, #tpu.memory_space<vmem>>, %arg7: memref<1x16xf32, #tpu.memory_space<vmem>>, %arg8: memref<1x16xf32, #tpu.memory_space<vmem>>, %arg9: memref<9x16x32xbf16, #tpu.memory_space<vmem>>, %arg10: memref<1x32xf32, #tpu.memory_space<vmem>>, %arg11: memref<1x32xf32, #tpu.memory_space<vmem>>, %arg12: memref<1x16x32xf32, #tpu.memory_space<vmem>>) attributes {dimension_semantics = [#tpu.dimension_semantics<parallel>, #tpu.dimension_semantics<parallel>], iteration_bounds = array<i64: 2, 2>, scalar_prefetch = 0 : i64, scratch_operands = 0 : i64, tpu.core_type = #tpu.core_type<tc>, window_params = [{transform_indices = @transform_0, window_bounds = array<i64: 1, 1, 40, 16>}, {pipeline_mode = #tpu.pipeline_mode<synchronous>, transform_indices = @transform_1, window_bounds = array<i64: 144, 8>}, {pipeline_mode = #tpu.pipeline_mode<synchronous>, transform_indices = @transform_2, window_bounds = array<i64: 1, 8>}, {pipeline_mode = #tpu.pipeline_mode<synchronous>, transform_indices = @transform_3, window_bounds = array<i64: 1, 8>}, {pipeline_mode = #tpu.pipeline_mode<synchronous>, transform_indices = @transform_4, window_bounds = array<i64: 9, 8, 16>}, {pipeline_mode = #tpu.pipeline_mode<synchronous>, transform_indices = @transform_5, window_bounds = array<i64: 1, 16>}, {pipeline_mode = #tpu.pipeline_mode<synchronous>, transform_indices = @transform_6, window_bounds = array<i64: 1, 16>}, {pipeline_mode = #tpu.pipeline_mode<synchronous>, transform_indices = @transform_7, window_bounds = array<i64: 9, 16, 32>}, {pipeline_mode = #tpu.pipeline_mode<synchronous>, transform_indices = @transform_8, window_bounds = array<i64: 1, 32>}, {pipeline_mode = #tpu.pipeline_mode<synchronous>, transform_indices = @transform_9, window_bounds = array<i64: 1, 32>}, {transform_indices = @transform_10, window_bounds = array<i64: 1, 16, 32>}]} {
    %c16_i32 = arith.constant 16 : i32
    %0 = arith.muli %arg1, %c16_i32 : i32
    %c0 = arith.constant 0 : index
    %c0_0 = arith.constant 0 : index
    %c0_1 = arith.constant 0 : index
    %c0_2 = arith.constant 0 : index
    %1 = vector.load %arg2[%c0, %c0_0, %c0_1, %c0_2] : memref<1x1x40x16xf32, #tpu.memory_space<vmem>>, vector<1x1x40x16xf32>
    %2 = vector.shape_cast %1 : vector<1x1x40x16xf32> to vector<40x16xf32>
    %3 = arith.truncf %2 : vector<40x16xf32> to vector<40x16xbf16>
    %4 = vector.extract_strided_slice %3 {offsets = [0, 0], sizes = [32, 16], strides = [1, 1]} : vector<40x16xbf16> to vector<32x16xbf16>
    %5 = vector.extract_strided_slice %3 {offsets = [1, 0], sizes = [32, 16], strides = [1, 1]} : vector<40x16xbf16> to vector<32x16xbf16>
    %6 = vector.extract_strided_slice %3 {offsets = [2, 0], sizes = [32, 16], strides = [1, 1]} : vector<40x16xbf16> to vector<32x16xbf16>
    %7 = vector.extract_strided_slice %3 {offsets = [3, 0], sizes = [32, 16], strides = [1, 1]} : vector<40x16xbf16> to vector<32x16xbf16>
    %8 = vector.extract_strided_slice %3 {offsets = [4, 0], sizes = [32, 16], strides = [1, 1]} : vector<40x16xbf16> to vector<32x16xbf16>
    %9 = vector.extract_strided_slice %3 {offsets = [5, 0], sizes = [32, 16], strides = [1, 1]} : vector<40x16xbf16> to vector<32x16xbf16>
    %10 = vector.extract_strided_slice %3 {offsets = [6, 0], sizes = [32, 16], strides = [1, 1]} : vector<40x16xbf16> to vector<32x16xbf16>
    %11 = vector.extract_strided_slice %3 {offsets = [7, 0], sizes = [32, 16], strides = [1, 1]} : vector<40x16xbf16> to vector<32x16xbf16>
    %12 = vector.extract_strided_slice %3 {offsets = [8, 0], sizes = [32, 16], strides = [1, 1]} : vector<40x16xbf16> to vector<32x16xbf16>
    %13 = tpu.concatenate %4, %5, %6, %7, %8, %9, %10, %11, %12 in 1 : vector<32x16xbf16>, vector<32x16xbf16>, vector<32x16xbf16>, vector<32x16xbf16>, vector<32x16xbf16>, vector<32x16xbf16>, vector<32x16xbf16>, vector<32x16xbf16>, vector<32x16xbf16> -> vector<32x144xbf16>
    %c0_3 = arith.constant 0 : index
    %c0_4 = arith.constant 0 : index
    %14 = vector.load %arg3[%c0_3, %c0_4] : memref<144x8xbf16, #tpu.memory_space<vmem>>, vector<144x8xbf16>
    %cst = arith.constant dense<0.000000e+00> : vector<32x8xf32>
    %15 = tpu.matmul %13, %14, %cst {dimension_numbers = #tpu.dot_dimension_numbers<[1], [0], [0], [1], [0, 0, 1, 1], [], []>} : vector<32x144xbf16>, vector<144x8xbf16>, vector<32x8xf32> -> vector<32x8xf32>
    %c8_i32 = arith.constant 8 : i32
    %16 = arith.subi %0, %c8_i32 : i32
    %c0_5 = arith.constant 0 : index
    %c0_6 = arith.constant 0 : index
    %17 = vector.load %arg4[%c0_5, %c0_6] : memref<1x8xf32, #tpu.memory_space<vmem>>, vector<1x8xf32>
    %18 = vector.broadcast %17 : vector<1x8xf32> to vector<32x8xf32>
    %19 = arith.mulf %15, %18 : vector<32x8xf32>
    %c0_7 = arith.constant 0 : index
    %c0_8 = arith.constant 0 : index
    %20 = vector.load %arg5[%c0_7, %c0_8] : memref<1x8xf32, #tpu.memory_space<vmem>>, vector<1x8xf32>
    %21 = vector.broadcast %20 : vector<1x8xf32> to vector<32x8xf32>
    %22 = arith.addf %19, %21 : vector<32x8xf32>
    %cst_9 = arith.constant 0.000000e+00 : f32
    %23 = vector.broadcast %cst_9 : f32 to vector<32x8xf32>
    %24 = arith.cmpf ogt, %22, %23 : vector<32x8xf32>
    %cst_10 = arith.constant 0.000000e+00 : f32
    %25 = vector.broadcast %cst_10 : f32 to vector<32x8xf32>
    %26 = arith.minimumf %22, %25 : vector<32x8xf32>
    %27 = math.exp %26 : vector<32x8xf32>
    %cst_11 = arith.constant 1.000000e+00 : f32
    %28 = vector.broadcast %cst_11 : f32 to vector<32x8xf32>
    %29 = arith.subf %27, %28 : vector<32x8xf32>
    %30 = arith.select %24, %22, %29 : vector<32x8xi1>, vector<32x8xf32>
    %31 = tpu.iota {dimensions = array<i32: 0>} : vector<32x1xi32>
    %32 = vector.broadcast %16 : i32 to vector<32x1xi32>
    %33 = arith.addi %32, %31 : vector<32x1xi32>
    %c0_i32 = arith.constant 0 : i32
    %34 = vector.broadcast %c0_i32 : i32 to vector<32x1xi32>
    %35 = arith.cmpi sge, %33, %34 : vector<32x1xi32>
    %c32_i32 = arith.constant 32 : i32
    %36 = vector.broadcast %c32_i32 : i32 to vector<32x1xi32>
    %37 = arith.cmpi slt, %33, %36 : vector<32x1xi32>
    %38 = arith.andi %35, %37 : vector<32x1xi1>
    %39 = arith.extui %38 : vector<32x1xi1> to vector<32x1xi32>
    %40 = arith.sitofp %39 : vector<32x1xi32> to vector<32x1xf32>
    %41 = vector.broadcast %40 : vector<32x1xf32> to vector<32x8xf32>
    %42 = arith.mulf %30, %41 : vector<32x8xf32>
    %43 = arith.truncf %42 : vector<32x8xf32> to vector<32x8xbf16>
    %44 = vector.extract_strided_slice %43 {offsets = [0, 0], sizes = [24, 8], strides = [1, 1]} : vector<32x8xbf16> to vector<24x8xbf16>
    %c0_12 = arith.constant 0 : index
    %c0_13 = arith.constant 0 : index
    %c0_14 = arith.constant 0 : index
    %45 = vector.load %arg6[%c0_12, %c0_13, %c0_14] : memref<9x8x16xbf16, #tpu.memory_space<vmem>>, vector<1x8x16xbf16>
    %46 = vector.shape_cast %45 : vector<1x8x16xbf16> to vector<8x16xbf16>
    %cst_15 = arith.constant dense<0.000000e+00> : vector<24x16xf32>
    %47 = tpu.matmul %44, %46, %cst_15 {dimension_numbers = #tpu.dot_dimension_numbers<[1], [0], [0], [1], [0, 0, 1, 1], [], []>} : vector<24x8xbf16>, vector<8x16xbf16>, vector<24x16xf32> -> vector<24x16xf32>
    %48 = vector.extract_strided_slice %43 {offsets = [1, 0], sizes = [24, 8], strides = [1, 1]} : vector<32x8xbf16> to vector<24x8xbf16>
    %c1 = arith.constant 1 : index
    %c0_16 = arith.constant 0 : index
    %c0_17 = arith.constant 0 : index
    %49 = vector.load %arg6[%c1, %c0_16, %c0_17] : memref<9x8x16xbf16, #tpu.memory_space<vmem>>, vector<1x8x16xbf16>
    %50 = vector.shape_cast %49 : vector<1x8x16xbf16> to vector<8x16xbf16>
    %cst_18 = arith.constant dense<0.000000e+00> : vector<24x16xf32>
    %51 = tpu.matmul %48, %50, %cst_18 {dimension_numbers = #tpu.dot_dimension_numbers<[1], [0], [0], [1], [0, 0, 1, 1], [], []>} : vector<24x8xbf16>, vector<8x16xbf16>, vector<24x16xf32> -> vector<24x16xf32>
    %52 = arith.addf %47, %51 : vector<24x16xf32>
    %53 = vector.extract_strided_slice %43 {offsets = [2, 0], sizes = [24, 8], strides = [1, 1]} : vector<32x8xbf16> to vector<24x8xbf16>
    %c2 = arith.constant 2 : index
    %c0_19 = arith.constant 0 : index
    %c0_20 = arith.constant 0 : index
    %54 = vector.load %arg6[%c2, %c0_19, %c0_20] : memref<9x8x16xbf16, #tpu.memory_space<vmem>>, vector<1x8x16xbf16>
    %55 = vector.shape_cast %54 : vector<1x8x16xbf16> to vector<8x16xbf16>
    %cst_21 = arith.constant dense<0.000000e+00> : vector<24x16xf32>
    %56 = tpu.matmul %53, %55, %cst_21 {dimension_numbers = #tpu.dot_dimension_numbers<[1], [0], [0], [1], [0, 0, 1, 1], [], []>} : vector<24x8xbf16>, vector<8x16xbf16>, vector<24x16xf32> -> vector<24x16xf32>
    %57 = arith.addf %52, %56 : vector<24x16xf32>
    %58 = vector.extract_strided_slice %43 {offsets = [3, 0], sizes = [24, 8], strides = [1, 1]} : vector<32x8xbf16> to vector<24x8xbf16>
    %c3 = arith.constant 3 : index
    %c0_22 = arith.constant 0 : index
    %c0_23 = arith.constant 0 : index
    %59 = vector.load %arg6[%c3, %c0_22, %c0_23] : memref<9x8x16xbf16, #tpu.memory_space<vmem>>, vector<1x8x16xbf16>
    %60 = vector.shape_cast %59 : vector<1x8x16xbf16> to vector<8x16xbf16>
    %cst_24 = arith.constant dense<0.000000e+00> : vector<24x16xf32>
    %61 = tpu.matmul %58, %60, %cst_24 {dimension_numbers = #tpu.dot_dimension_numbers<[1], [0], [0], [1], [0, 0, 1, 1], [], []>} : vector<24x8xbf16>, vector<8x16xbf16>, vector<24x16xf32> -> vector<24x16xf32>
    %62 = arith.addf %57, %61 : vector<24x16xf32>
    %63 = vector.extract_strided_slice %43 {offsets = [4, 0], sizes = [24, 8], strides = [1, 1]} : vector<32x8xbf16> to vector<24x8xbf16>
    %c4 = arith.constant 4 : index
    %c0_25 = arith.constant 0 : index
    %c0_26 = arith.constant 0 : index
    %64 = vector.load %arg6[%c4, %c0_25, %c0_26] : memref<9x8x16xbf16, #tpu.memory_space<vmem>>, vector<1x8x16xbf16>
    %65 = vector.shape_cast %64 : vector<1x8x16xbf16> to vector<8x16xbf16>
    %cst_27 = arith.constant dense<0.000000e+00> : vector<24x16xf32>
    %66 = tpu.matmul %63, %65, %cst_27 {dimension_numbers = #tpu.dot_dimension_numbers<[1], [0], [0], [1], [0, 0, 1, 1], [], []>} : vector<24x8xbf16>, vector<8x16xbf16>, vector<24x16xf32> -> vector<24x16xf32>
    %67 = arith.addf %62, %66 : vector<24x16xf32>
    %68 = vector.extract_strided_slice %43 {offsets = [5, 0], sizes = [24, 8], strides = [1, 1]} : vector<32x8xbf16> to vector<24x8xbf16>
    %c5 = arith.constant 5 : index
    %c0_28 = arith.constant 0 : index
    %c0_29 = arith.constant 0 : index
    %69 = vector.load %arg6[%c5, %c0_28, %c0_29] : memref<9x8x16xbf16, #tpu.memory_space<vmem>>, vector<1x8x16xbf16>
    %70 = vector.shape_cast %69 : vector<1x8x16xbf16> to vector<8x16xbf16>
    %cst_30 = arith.constant dense<0.000000e+00> : vector<24x16xf32>
    %71 = tpu.matmul %68, %70, %cst_30 {dimension_numbers = #tpu.dot_dimension_numbers<[1], [0], [0], [1], [0, 0, 1, 1], [], []>} : vector<24x8xbf16>, vector<8x16xbf16>, vector<24x16xf32> -> vector<24x16xf32>
    %72 = arith.addf %67, %71 : vector<24x16xf32>
    %73 = vector.extract_strided_slice %43 {offsets = [6, 0], sizes = [24, 8], strides = [1, 1]} : vector<32x8xbf16> to vector<24x8xbf16>
    %c6 = arith.constant 6 : index
    %c0_31 = arith.constant 0 : index
    %c0_32 = arith.constant 0 : index
    %74 = vector.load %arg6[%c6, %c0_31, %c0_32] : memref<9x8x16xbf16, #tpu.memory_space<vmem>>, vector<1x8x16xbf16>
    %75 = vector.shape_cast %74 : vector<1x8x16xbf16> to vector<8x16xbf16>
    %cst_33 = arith.constant dense<0.000000e+00> : vector<24x16xf32>
    %76 = tpu.matmul %73, %75, %cst_33 {dimension_numbers = #tpu.dot_dimension_numbers<[1], [0], [0], [1], [0, 0, 1, 1], [], []>} : vector<24x8xbf16>, vector<8x16xbf16>, vector<24x16xf32> -> vector<24x16xf32>
    %77 = arith.addf %72, %76 : vector<24x16xf32>
    %78 = vector.extract_strided_slice %43 {offsets = [7, 0], sizes = [24, 8], strides = [1, 1]} : vector<32x8xbf16> to vector<24x8xbf16>
    %c7 = arith.constant 7 : index
    %c0_34 = arith.constant 0 : index
    %c0_35 = arith.constant 0 : index
    %79 = vector.load %arg6[%c7, %c0_34, %c0_35] : memref<9x8x16xbf16, #tpu.memory_space<vmem>>, vector<1x8x16xbf16>
    %80 = vector.shape_cast %79 : vector<1x8x16xbf16> to vector<8x16xbf16>
    %cst_36 = arith.constant dense<0.000000e+00> : vector<24x16xf32>
    %81 = tpu.matmul %78, %80, %cst_36 {dimension_numbers = #tpu.dot_dimension_numbers<[1], [0], [0], [1], [0, 0, 1, 1], [], []>} : vector<24x8xbf16>, vector<8x16xbf16>, vector<24x16xf32> -> vector<24x16xf32>
    %82 = arith.addf %77, %81 : vector<24x16xf32>
    %83 = vector.extract_strided_slice %43 {offsets = [8, 0], sizes = [24, 8], strides = [1, 1]} : vector<32x8xbf16> to vector<24x8xbf16>
    %c8 = arith.constant 8 : index
    %c0_37 = arith.constant 0 : index
    %c0_38 = arith.constant 0 : index
    %84 = vector.load %arg6[%c8, %c0_37, %c0_38] : memref<9x8x16xbf16, #tpu.memory_space<vmem>>, vector<1x8x16xbf16>
    %85 = vector.shape_cast %84 : vector<1x8x16xbf16> to vector<8x16xbf16>
    %cst_39 = arith.constant dense<0.000000e+00> : vector<24x16xf32>
    %86 = tpu.matmul %83, %85, %cst_39 {dimension_numbers = #tpu.dot_dimension_numbers<[1], [0], [0], [1], [0, 0, 1, 1], [], []>} : vector<24x8xbf16>, vector<8x16xbf16>, vector<24x16xf32> -> vector<24x16xf32>
    %87 = arith.addf %82, %86 : vector<24x16xf32>
    %c4_i32 = arith.constant 4 : i32
    %88 = arith.subi %0, %c4_i32 : i32
    %c0_40 = arith.constant 0 : index
    %c0_41 = arith.constant 0 : index
    %89 = vector.load %arg7[%c0_40, %c0_41] : memref<1x16xf32, #tpu.memory_space<vmem>>, vector<1x16xf32>
    %90 = vector.broadcast %89 : vector<1x16xf32> to vector<24x16xf32>
    %91 = arith.mulf %87, %90 : vector<24x16xf32>
    %c0_42 = arith.constant 0 : index
    %c0_43 = arith.constant 0 : index
    %92 = vector.load %arg8[%c0_42, %c0_43] : memref<1x16xf32, #tpu.memory_space<vmem>>, vector<1x16xf32>
    %93 = vector.broadcast %92 : vector<1x16xf32> to vector<24x16xf32>
    %94 = arith.addf %91, %93 : vector<24x16xf32>
    %cst_44 = arith.constant 0.000000e+00 : f32
    %95 = vector.broadcast %cst_44 : f32 to vector<24x16xf32>
    %96 = arith.cmpf ogt, %94, %95 : vector<24x16xf32>
    %cst_45 = arith.constant 0.000000e+00 : f32
    %97 = vector.broadcast %cst_45 : f32 to vector<24x16xf32>
    %98 = arith.minimumf %94, %97 : vector<24x16xf32>
    %99 = math.exp %98 : vector<24x16xf32>
    %cst_46 = arith.constant 1.000000e+00 : f32
    %100 = vector.broadcast %cst_46 : f32 to vector<24x16xf32>
    %101 = arith.subf %99, %100 : vector<24x16xf32>
    %102 = arith.select %96, %94, %101 : vector<24x16xi1>, vector<24x16xf32>
    %103 = tpu.iota {dimensions = array<i32: 0>} : vector<24x1xi32>
    %104 = vector.broadcast %88 : i32 to vector<24x1xi32>
    %105 = arith.addi %104, %103 : vector<24x1xi32>
    %c0_i32_47 = arith.constant 0 : i32
    %106 = vector.broadcast %c0_i32_47 : i32 to vector<24x1xi32>
    %107 = arith.cmpi sge, %105, %106 : vector<24x1xi32>
    %c32_i32_48 = arith.constant 32 : i32
    %108 = vector.broadcast %c32_i32_48 : i32 to vector<24x1xi32>
    %109 = arith.cmpi slt, %105, %108 : vector<24x1xi32>
    %110 = arith.andi %107, %109 : vector<24x1xi1>
    %111 = arith.extui %110 : vector<24x1xi1> to vector<24x1xi32>
    %112 = arith.sitofp %111 : vector<24x1xi32> to vector<24x1xf32>
    %113 = vector.broadcast %112 : vector<24x1xf32> to vector<24x16xf32>
    %114 = arith.mulf %102, %113 : vector<24x16xf32>
    %115 = arith.truncf %114 : vector<24x16xf32> to vector<24x16xbf16>
    %116 = vector.extract_strided_slice %115 {offsets = [0, 0], sizes = [16, 16], strides = [1, 1]} : vector<24x16xbf16> to vector<16x16xbf16>
    %c0_49 = arith.constant 0 : index
    %c0_50 = arith.constant 0 : index
    %c0_51 = arith.constant 0 : index
    %117 = vector.load %arg9[%c0_49, %c0_50, %c0_51] : memref<9x16x32xbf16, #tpu.memory_space<vmem>>, vector<1x16x32xbf16>
    %118 = vector.shape_cast %117 : vector<1x16x32xbf16> to vector<16x32xbf16>
    %cst_52 = arith.constant dense<0.000000e+00> : vector<16x32xf32>
    %119 = tpu.matmul %116, %118, %cst_52 {dimension_numbers = #tpu.dot_dimension_numbers<[1], [0], [0], [1], [0, 0, 1, 1], [], []>} : vector<16x16xbf16>, vector<16x32xbf16>, vector<16x32xf32> -> vector<16x32xf32>
    %120 = vector.extract_strided_slice %115 {offsets = [1, 0], sizes = [16, 16], strides = [1, 1]} : vector<24x16xbf16> to vector<16x16xbf16>
    %c1_53 = arith.constant 1 : index
    %c0_54 = arith.constant 0 : index
    %c0_55 = arith.constant 0 : index
    %121 = vector.load %arg9[%c1_53, %c0_54, %c0_55] : memref<9x16x32xbf16, #tpu.memory_space<vmem>>, vector<1x16x32xbf16>
    %122 = vector.shape_cast %121 : vector<1x16x32xbf16> to vector<16x32xbf16>
    %cst_56 = arith.constant dense<0.000000e+00> : vector<16x32xf32>
    %123 = tpu.matmul %120, %122, %cst_56 {dimension_numbers = #tpu.dot_dimension_numbers<[1], [0], [0], [1], [0, 0, 1, 1], [], []>} : vector<16x16xbf16>, vector<16x32xbf16>, vector<16x32xf32> -> vector<16x32xf32>
    %124 = arith.addf %119, %123 : vector<16x32xf32>
    %125 = vector.extract_strided_slice %115 {offsets = [2, 0], sizes = [16, 16], strides = [1, 1]} : vector<24x16xbf16> to vector<16x16xbf16>
    %c2_57 = arith.constant 2 : index
    %c0_58 = arith.constant 0 : index
    %c0_59 = arith.constant 0 : index
    %126 = vector.load %arg9[%c2_57, %c0_58, %c0_59] : memref<9x16x32xbf16, #tpu.memory_space<vmem>>, vector<1x16x32xbf16>
    %127 = vector.shape_cast %126 : vector<1x16x32xbf16> to vector<16x32xbf16>
    %cst_60 = arith.constant dense<0.000000e+00> : vector<16x32xf32>
    %128 = tpu.matmul %125, %127, %cst_60 {dimension_numbers = #tpu.dot_dimension_numbers<[1], [0], [0], [1], [0, 0, 1, 1], [], []>} : vector<16x16xbf16>, vector<16x32xbf16>, vector<16x32xf32> -> vector<16x32xf32>
    %129 = arith.addf %124, %128 : vector<16x32xf32>
    %130 = vector.extract_strided_slice %115 {offsets = [3, 0], sizes = [16, 16], strides = [1, 1]} : vector<24x16xbf16> to vector<16x16xbf16>
    %c3_61 = arith.constant 3 : index
    %c0_62 = arith.constant 0 : index
    %c0_63 = arith.constant 0 : index
    %131 = vector.load %arg9[%c3_61, %c0_62, %c0_63] : memref<9x16x32xbf16, #tpu.memory_space<vmem>>, vector<1x16x32xbf16>
    %132 = vector.shape_cast %131 : vector<1x16x32xbf16> to vector<16x32xbf16>
    %cst_64 = arith.constant dense<0.000000e+00> : vector<16x32xf32>
    %133 = tpu.matmul %130, %132, %cst_64 {dimension_numbers = #tpu.dot_dimension_numbers<[1], [0], [0], [1], [0, 0, 1, 1], [], []>} : vector<16x16xbf16>, vector<16x32xbf16>, vector<16x32xf32> -> vector<16x32xf32>
    %134 = arith.addf %129, %133 : vector<16x32xf32>
    %135 = vector.extract_strided_slice %115 {offsets = [4, 0], sizes = [16, 16], strides = [1, 1]} : vector<24x16xbf16> to vector<16x16xbf16>
    %c4_65 = arith.constant 4 : index
    %c0_66 = arith.constant 0 : index
    %c0_67 = arith.constant 0 : index
    %136 = vector.load %arg9[%c4_65, %c0_66, %c0_67] : memref<9x16x32xbf16, #tpu.memory_space<vmem>>, vector<1x16x32xbf16>
    %137 = vector.shape_cast %136 : vector<1x16x32xbf16> to vector<16x32xbf16>
    %cst_68 = arith.constant dense<0.000000e+00> : vector<16x32xf32>
    %138 = tpu.matmul %135, %137, %cst_68 {dimension_numbers = #tpu.dot_dimension_numbers<[1], [0], [0], [1], [0, 0, 1, 1], [], []>} : vector<16x16xbf16>, vector<16x32xbf16>, vector<16x32xf32> -> vector<16x32xf32>
    %139 = arith.addf %134, %138 : vector<16x32xf32>
    %140 = vector.extract_strided_slice %115 {offsets = [5, 0], sizes = [16, 16], strides = [1, 1]} : vector<24x16xbf16> to vector<16x16xbf16>
    %c5_69 = arith.constant 5 : index
    %c0_70 = arith.constant 0 : index
    %c0_71 = arith.constant 0 : index
    %141 = vector.load %arg9[%c5_69, %c0_70, %c0_71] : memref<9x16x32xbf16, #tpu.memory_space<vmem>>, vector<1x16x32xbf16>
    %142 = vector.shape_cast %141 : vector<1x16x32xbf16> to vector<16x32xbf16>
    %cst_72 = arith.constant dense<0.000000e+00> : vector<16x32xf32>
    %143 = tpu.matmul %140, %142, %cst_72 {dimension_numbers = #tpu.dot_dimension_numbers<[1], [0], [0], [1], [0, 0, 1, 1], [], []>} : vector<16x16xbf16>, vector<16x32xbf16>, vector<16x32xf32> -> vector<16x32xf32>
    %144 = arith.addf %139, %143 : vector<16x32xf32>
    %145 = vector.extract_strided_slice %115 {offsets = [6, 0], sizes = [16, 16], strides = [1, 1]} : vector<24x16xbf16> to vector<16x16xbf16>
    %c6_73 = arith.constant 6 : index
    %c0_74 = arith.constant 0 : index
    %c0_75 = arith.constant 0 : index
    %146 = vector.load %arg9[%c6_73, %c0_74, %c0_75] : memref<9x16x32xbf16, #tpu.memory_space<vmem>>, vector<1x16x32xbf16>
    %147 = vector.shape_cast %146 : vector<1x16x32xbf16> to vector<16x32xbf16>
    %cst_76 = arith.constant dense<0.000000e+00> : vector<16x32xf32>
    %148 = tpu.matmul %145, %147, %cst_76 {dimension_numbers = #tpu.dot_dimension_numbers<[1], [0], [0], [1], [0, 0, 1, 1], [], []>} : vector<16x16xbf16>, vector<16x32xbf16>, vector<16x32xf32> -> vector<16x32xf32>
    %149 = arith.addf %144, %148 : vector<16x32xf32>
    %150 = vector.extract_strided_slice %115 {offsets = [7, 0], sizes = [16, 16], strides = [1, 1]} : vector<24x16xbf16> to vector<16x16xbf16>
    %c7_77 = arith.constant 7 : index
    %c0_78 = arith.constant 0 : index
    %c0_79 = arith.constant 0 : index
    %151 = vector.load %arg9[%c7_77, %c0_78, %c0_79] : memref<9x16x32xbf16, #tpu.memory_space<vmem>>, vector<1x16x32xbf16>
    %152 = vector.shape_cast %151 : vector<1x16x32xbf16> to vector<16x32xbf16>
    %cst_80 = arith.constant dense<0.000000e+00> : vector<16x32xf32>
    %153 = tpu.matmul %150, %152, %cst_80 {dimension_numbers = #tpu.dot_dimension_numbers<[1], [0], [0], [1], [0, 0, 1, 1], [], []>} : vector<16x16xbf16>, vector<16x32xbf16>, vector<16x32xf32> -> vector<16x32xf32>
    %154 = arith.addf %149, %153 : vector<16x32xf32>
    %155 = vector.extract_strided_slice %115 {offsets = [8, 0], sizes = [16, 16], strides = [1, 1]} : vector<24x16xbf16> to vector<16x16xbf16>
    %c8_81 = arith.constant 8 : index
    %c0_82 = arith.constant 0 : index
    %c0_83 = arith.constant 0 : index
    %156 = vector.load %arg9[%c8_81, %c0_82, %c0_83] : memref<9x16x32xbf16, #tpu.memory_space<vmem>>, vector<1x16x32xbf16>
    %157 = vector.shape_cast %156 : vector<1x16x32xbf16> to vector<16x32xbf16>
    %cst_84 = arith.constant dense<0.000000e+00> : vector<16x32xf32>
    %158 = tpu.matmul %155, %157, %cst_84 {dimension_numbers = #tpu.dot_dimension_numbers<[1], [0], [0], [1], [0, 0, 1, 1], [], []>} : vector<16x16xbf16>, vector<16x32xbf16>, vector<16x32xf32> -> vector<16x32xf32>
    %159 = arith.addf %154, %158 : vector<16x32xf32>
    %c0_85 = arith.constant 0 : index
    %c0_86 = arith.constant 0 : index
    %160 = vector.load %arg10[%c0_85, %c0_86] : memref<1x32xf32, #tpu.memory_space<vmem>>, vector<1x32xf32>
    %161 = vector.broadcast %160 : vector<1x32xf32> to vector<16x32xf32>
    %162 = arith.mulf %159, %161 : vector<16x32xf32>
    %c0_87 = arith.constant 0 : index
    %c0_88 = arith.constant 0 : index
    %163 = vector.load %arg11[%c0_87, %c0_88] : memref<1x32xf32, #tpu.memory_space<vmem>>, vector<1x32xf32>
    %164 = vector.broadcast %163 : vector<1x32xf32> to vector<16x32xf32>
    %165 = arith.addf %162, %164 : vector<16x32xf32>
    %cst_89 = arith.constant 0.000000e+00 : f32
    %166 = vector.broadcast %cst_89 : f32 to vector<16x32xf32>
    %167 = arith.cmpf ogt, %165, %166 : vector<16x32xf32>
    %cst_90 = arith.constant 0.000000e+00 : f32
    %168 = vector.broadcast %cst_90 : f32 to vector<16x32xf32>
    %169 = arith.minimumf %165, %168 : vector<16x32xf32>
    %170 = math.exp %169 : vector<16x32xf32>
    %cst_91 = arith.constant 1.000000e+00 : f32
    %171 = vector.broadcast %cst_91 : f32 to vector<16x32xf32>
    %172 = arith.subf %170, %171 : vector<16x32xf32>
    %173 = arith.select %167, %165, %172 : vector<16x32xi1>, vector<16x32xf32>
    %c0_92 = arith.constant 0 : index
    %c0_93 = arith.constant 0 : index
    %c0_94 = arith.constant 0 : index
    %174 = vector.load %arg12[%c0_92, %c0_93, %c0_94] : memref<1x16x32xf32, #tpu.memory_space<vmem>>, vector<1x16x32xf32>
    %175 = vector.shape_cast %174 : vector<1x16x32xf32> to vector<16x32xf32>
    %176 = vector.shape_cast %173 : vector<16x32xf32> to vector<1x16x32xf32>
    tpu.vector_store %arg12[%c0_92, %c0_93, %c0_94], %176 {strides = array<i32>} : memref<1x16x32xf32, #tpu.memory_space<vmem>>, vector<1x16x32xf32>,
    return
  }
  func.func @transform_0(%arg0: i32, %arg1: i32) -> (i32, i32, i32, i32) {
    %c0_i32 = arith.constant 0 : i32
    %c0_i32_0 = arith.constant 0 : i32
    %c0_i32_1 = arith.constant 0 : i32
    return %arg0, %arg1, %c0_i32, %c0_i32_0 : i32, i32, i32, i32
  }
  func.func @transform_1(%arg0: i32, %arg1: i32) -> (i32, i32) {
    %c0_i32 = arith.constant 0 : i32
    %c0_i32_0 = arith.constant 0 : i32
    %c0_i32_1 = arith.constant 0 : i32
    return %c0_i32, %c0_i32_0 : i32, i32
  }
  func.func @transform_2(%arg0: i32, %arg1: i32) -> (i32, i32) {
    %c0_i32 = arith.constant 0 : i32
    %c0_i32_0 = arith.constant 0 : i32
    %c0_i32_1 = arith.constant 0 : i32
    return %c0_i32, %c0_i32_0 : i32, i32
  }
  func.func @transform_3(%arg0: i32, %arg1: i32) -> (i32, i32) {
    %c0_i32 = arith.constant 0 : i32
    %c0_i32_0 = arith.constant 0 : i32
    %c0_i32_1 = arith.constant 0 : i32
    return %c0_i32, %c0_i32_0 : i32, i32
  }
  func.func @transform_4(%arg0: i32, %arg1: i32) -> (i32, i32, i32) {
    %c0_i32 = arith.constant 0 : i32
    %c0_i32_0 = arith.constant 0 : i32
    %c0_i32_1 = arith.constant 0 : i32
    %c0_i32_2 = arith.constant 0 : i32
    return %c0_i32, %c0_i32_0, %c0_i32_1 : i32, i32, i32
  }
  func.func @transform_5(%arg0: i32, %arg1: i32) -> (i32, i32) {
    %c0_i32 = arith.constant 0 : i32
    %c0_i32_0 = arith.constant 0 : i32
    %c0_i32_1 = arith.constant 0 : i32
    return %c0_i32, %c0_i32_0 : i32, i32
  }
  func.func @transform_6(%arg0: i32, %arg1: i32) -> (i32, i32) {
    %c0_i32 = arith.constant 0 : i32
    %c0_i32_0 = arith.constant 0 : i32
    %c0_i32_1 = arith.constant 0 : i32
    return %c0_i32, %c0_i32_0 : i32, i32
  }
  func.func @transform_7(%arg0: i32, %arg1: i32) -> (i32, i32, i32) {
    %c0_i32 = arith.constant 0 : i32
    %c0_i32_0 = arith.constant 0 : i32
    %c0_i32_1 = arith.constant 0 : i32
    %c0_i32_2 = arith.constant 0 : i32
    return %c0_i32, %c0_i32_0, %c0_i32_1 : i32, i32, i32
  }
  func.func @transform_8(%arg0: i32, %arg1: i32) -> (i32, i32) {
    %c0_i32 = arith.constant 0 : i32
    %c0_i32_0 = arith.constant 0 : i32
    %c0_i32_1 = arith.constant 0 : i32
    return %c0_i32, %c0_i32_0 : i32, i32
  }
  func.func @transform_9(%arg0: i32, %arg1: i32) -> (i32, i32) {
    %c0_i32 = arith.constant 0 : i32
    %c0_i32_0 = arith.constant 0 : i32
    %c0_i32_1 = arith.constant 0 : i32
    return %c0_i32, %c0_i32_0 : i32, i32
  }
  func.func @transform_10(%arg0: i32, %arg1: i32) -> (i32, i32, i32) {
    %c0_i32 = arith.constant 0 : i32
    %c0_i32_0 = arith.constant 0 : i32
    return %arg0, %arg1, %c0_i32 : i32, i32, i32
  }
}

</mosaic_0001>

<bundles_post_ra>
// kernel: tpu_custom_call.1
= control target key start
LH: loop header
LB: loop body
LE: loop exit
PB: predicated region body
PF: predicated region fallthrough
CT: control target
= control target key end

     0   :  { %15 = vsyncpa [#allocation3], 0  ;;  %s3211_s0 = inlined_call_operand.vmem [shape: f32[2,2,40,16], index: 0, kind: input, shape index: {}]   ;;  %s3212_s1 = inlined_call_operand.vmem [shape: bf16[144,8], index: 1, kind: input, shape index: {}]   ;;  %s3213_s2 = inlined_call_operand.vmem [shape: f32[1,8], index: 2, kind: input, shape index: {}]   ;;  %s3214_s3 = inlined_call_operand.vmem [shape: f32[1,8], index: 3, kind: input, shape index: {}]   ;;  %s3215_s4 = inlined_call_operand.vmem [shape: bf16[9,8,16], index: 4, kind: input, shape index: {}]   ;;  %s3216_s5 = inlined_call_operand.vmem [shape: f32[1,16], index: 5, kind: input, shape index: {}]   ;;  %s3217_s6 = inlined_call_operand.vmem [shape: f32[1,16], index: 6, kind: input, shape index: {}]   ;;  %s3218_s7 = inlined_call_operand.vmem [shape: bf16[9,16,32], index: 7, kind: input, shape index: {}]   ;;  %s3219_s8 = inlined_call_operand.vmem [shape: f32[1,32], index: 8, kind: input, shape index: {}]   ;;  %s3220_s9 = inlined_call_operand.vmem [shape: f32[1,32], index: 9, kind: input, shape index: {}]   ;;  %s3221_s10 = inlined_call_operand.hbm [shape: f32[2,32,32], index: 10, kind: output, shape index: {}]  }
   0x1   :  { %17 = vsyncpa [#allocation3 + $0x1], 0  ;;  %s2731_s13 = smov 0   ;;  %s2733_s14 = smov 0  }
   0x2   :  { %s2735_s15 = smov 0   ;;  %s2737_s16 = smov 0  }
   0x3   :  { %s2739_s17 = smov 0   ;;  %s2741_s18 = smov 0  }
   0x4   :  { %s2743_s19 = smov 0   ;;  %s2745_s20 = smov 0  }
   0x5 LB: > { %3233 = sst [smem:[#allocation5_spill]] %s2653_s18  ;;  %s2093_s21 = sadd.s32 4294967295, %s2661_s20   ;;  %s2661_s20 = sphi %s2745_s20, %s23_s20   ;;  %s2657_s19 = sphi %s2743_s19, %s3269_s19   ;;  %s2653_s18 = sphi %s2741_s18, %s3264_s18   ;;  %s2649_s17 = sphi %s2739_s17, %s3263_s17   ;;  %s2645_s16 = sphi %s2737_s16, %s3262_s16   ;;  %s2641_s15 = sphi %s2735_s15, %s3268_s15   ;;  %s2637_s14 = sphi %s2733_s14, %s3267_s14   ;;  %s2633_s13 = sphi %s2731_s13, %s3266_s13  }
   0x6   : > { %3234 = sst [smem:[#allocation6_spill]] %s2657_s19  ;;  %s2094_s22 = sadd.s32 4294967294, %s2661_s20  }
   0x7   : > { %s32_s23 = sadd.s32 1, %s2653_s18  ;;  %s35_s24 = sadd.s32 1, %s2657_s19 }
   0x8   : > { %p33_p0 = scmp.ge.s32.totalorder %s32_s23, 2  ;;  %p271_p1 = scmp.ne.s32.totalorder %s2641_s15, %s2637_s14 }
   0x9   : > { %p272_p2 = scmp.eq.s32.totalorder %s2093_s21, 3  ;;  %p277_p5 = scmp.ne.s32.totalorder %s2637_s14, %s2633_s13 }
   0xa   : > { %s3271_s23 = smov (%p33_p0, %s32_s23), 0  ;;  %s3273_s24 = smov (!%p33_p0, %s35_s24), %s2657_s19 }
   0xb   : > { %3235 = sst [smem:[#allocation7_spill]] %s3271_s23  ;;  %s257_s25 = ssub.s32 %s2653_s18, %s3271_s23 }
   0xc   : > { %p2782_p3 = por %p272_p2, %p271_p1  ;;  %p37_p4 = scmp.ge.s32.totalorder %s3273_s24, 2 }
   0xd   : > { %p278_p6 = scmp.eq.s32.totalorder %s2094_s22, 3  ;;  %p2097_p7 = scmp.ge.s32.totalorder %s2661_s20, 1 }
   0xe   : > { %s3275_s24 = smov (%p37_p4, %s3273_s24), 0  ;;  %p335_p9 = scmp.lt.s32.totalorder %s2661_s20, 5 }
   0xf   : > { %3237 = sst [smem:[#allocation8_spill]] %s3275_s24  ;;  %p2791_p8 = por %p278_p6, %p277_p5 }
  0x10   : > { %s256_s28 = ssub.s32 %s2657_s19, %s3275_s24  ;;  %s261_s29 = sadd.s32 1, %s2641_s15 }
  0x11   : > { %s258_s30 = sor.u32 %s257_s25, %s256_s28  ;;  %p336_p10 = pnand %p2097_p7, %p335_p9 }
  0x12   : > { %p259_p11 = scmp.eq.s32.totalorder %s258_s30, 0  ;;  %p377_p12 = scmp.lt.s32.totalorder (!%p336_p10), %s2649_s17, 1  ;;  %v2663_v0 = vmov (!%p336_p10), 0   ;;  %v2531_v1 = vld [vmem:[%s3212_s1] sm:$0xff] (!%p336_p10)   ;;  %v2532_v2 = vld [vmem:[%s3212_s1 + $0x8] sm:$0xff] (!%p336_p10)   ;;  %v2533_v3 = vld [vmem:[%s3212_s1 + $0x10] sm:$0xff] (!%p336_p10)  }
  0x13   : > { %339 = sbr.rel (%p336_p10) target bundleno = 1120 (0x460), region = 60  ;;  %p379_p13 = scmp.lt.s32.totalorder (!%p336_p10), %s2645_s16, 1  ;;  %626 = vmatprep.subr.bf16.mxu0 (!%p336_p10), %v2663_v0  ;;  %2355 = vmatprep.subr.bf16.mxu1 (!%p336_p10), %v2663_v0  ;;  %vm453_vm0 = vcmask (!%p336_p10), 1045504   ;;  %vm425_vm1 = vcmask (!%p336_p10), 1046528   ;;  %vm3232_vm2 = vcmask (!%p336_p10), 1044480   ;;  %v2534_v12 = vld [vmem:[%s3212_s1 + $0x18] sm:$0xff] (!%p336_p10)  }
  0x14   : > { %s2800_s11 = scalar_select %p259_p11, %s2641_s15, %s261_s29  }
  0x15   : > { %627 = vmatpush1.bf16.msra.mxu0 (!%p336_p10), %v2531_v1  ;;  %2364 = vmatpush1.bf16.msra.mxu1 (!%p336_p10), %v2531_v1  ;;  %vm3231_vm3 = vsmask.f32 (!%p336_p10), 7424  ;;  %vm3230_vm4 = vsmask.f32 (!%p336_p10), 6400  ;;  %v2535_v27 = vld [vmem:[%s3212_s1 + $0x20] sm:$0xff] (!%p336_p10)   ;;  %v2536_v40 = vld [vmem:[%s3212_s1 + $0x28] sm:$0xff] (!%p336_p10)  }
  0x16   : > { %3239 = sst [smem:[#allocation9_spill]] %s2800_s11  ;;  %628 = vmatprep.subr.bf16.mxu0 (!%p336_p10), %v2663_v0  ;;  %2356 = vmatprep.subr.bf16.mxu1 (!%p336_p10), %v2663_v0  ;;  %s2664_s11 = smov (!%p336_p10), 64   ;;  %vm3229_vm5 = vsmask.f32 (!%p336_p10), 5376  ;;  %v2537_v55 = vld [vmem:[%s3212_s1 + $0x30] sm:$0xff] (!%p336_p10)   ;;  %vm505_vm6 = vcmask (!%p336_p10), 1043456  }
  0x17   : > { %s2666_s30 = smov (!%p336_p10), 96   ;;  %vm3228_vm7 = vsmask.f32 (!%p336_p10), 4352  ;;  %vm3227_vm8 = vcmask (!%p336_p10), 130048   ;;  %vm521_vm9 = vcmask (!%p336_p10), 392192   ;;  %vm3226_vm10 = vcmask (!%p336_p10), 261120  }
  0x18   : > { %vm526_vm11 = vcmask (!%p336_p10), 523264   ;;  %vm531_vm12 = vcmask (!%p336_p10), 654336   ;;  %vm536_vm13 = vcmask (!%p336_p10), 785408   ;;  %vm541_vm14 = vcmask (!%p336_p10), 916480   ;;  %s2673_s21 = smov (!%p336_p10), [#allocation2]  }
  0x19   : > { %629 = vmatpush1.bf16.msra.mxu0 (!%p336_p10), %v2532_v2  ;;  %2365 = vmatpush1.bf16.msra.mxu1 (!%p336_p10), %v2532_v2  ;;  %v2538_v2 = vld [vmem:[%s3212_s1 + $0x38] sm:$0xff] (!%p336_p10)  }
  0x1a   : > { %s378_s12 = scalar_select %p377_p12, %s2649_s17, 1  ;;  %630 = vmatprep.subr.bf16.mxu0 %v2663_v0  ;;  %2357 = vmatprep.subr.bf16.mxu1 %v2663_v0 }
  0x1b   : > { %s380_s25 = scalar_select %p379_p13, %s2645_s16, 1 }
  0x1c   : > { %s2447_s28 = smul.u32 10, %s378_s12 }
  0x1d   : > { %s2446_s24 = smul.u32 5, %s380_s25  ;;  %631 = vmatpush1.bf16.msra.mxu0 %v2533_v3  ;;  %2366 = vmatpush1.bf16.msra.mxu1 %v2533_v3  ;;  %s2665_s25 = smov 32  }
  0x1e   : > { %632 = vmatprep.subr.bf16.mxu0 %v2663_v0  ;;  %2358 = vmatprep.subr.bf16.mxu1 %v2663_v0 }
  0x1f   : > { %s383_s23 = sadd.s32 %s2447_s28, %s2446_s24  ;;  %s2670_s28 = smov 112  }
  0x20   : > { %s2099_s19 = sshll.u32 %s383_s23, 3  ;;  %s2668_s23 = smov 48  }
  0x21   : > { %s385_s22 = scalar_lea.vmem %s3211_s0, %s2099_s19  ;;  %633 = vmatpush1.bf16.msra.mxu0 %v2534_v12  ;;  %2367 = vmatpush1.bf16.msra.mxu1 %v2534_v12  ;;  %s2100_s24 = sshll.u32 %s2645_s16, 4 }
  0x22   : > { %v389_v4 = vld [vmem:[%s385_s22] sm:$0xff]  ;;  %v390_v5 = vld [vmem:[%s385_s22 + $0x8] sm:$0xff]  ;;  %v391_v6 = vld [vmem:[%s385_s22 + $0x10] sm:$0xff]  ;;  %634 = vmatprep.subr.bf16.mxu0 %v2663_v0  ;;  %2359 = vmatprep.subr.bf16.mxu1 %v2663_v0  ;;  %s2197_s19 = sshll.u32 %s2645_s16, 1 }
  0x23   : > { %v392_v7 = vld [vmem:[%s385_s22 + $0x18] sm:$0xff]  ;;  %v2824_v8 = vpack.c.bf16 %v390_v5, %v389_v4  ;;  %v393_v9 = vld [vmem:[%s385_s22 + $0x20] sm:$0xff]  ;;  %s2667_s22 = smov 16  }
  0x24   : > { %v2826_v10 = vpack.c.bf16 %v392_v7, %v391_v6  ;;  %v2828_v11 = vpack.c.bf16 %v393_v9, %v393_v9 }
  0x25   : > { %v454_v13 = vrot.slane %v2824_v8, 2  ;;  %v426_v14 = vrot.slane %v2824_v8, 1  ;;  %v480_v15 = vrot.slane %v2824_v8, 3  ;;  %v2837_v16 = vshrl.u32 %v2824_v8, 16  ;;  %635 = vmatpush1.bf16.msra.mxu0 %v2535_v27  ;;  %2368 = vmatpush1.bf16.msra.mxu1 %v2535_v27 }
  0x26   : > { %v455_v17 = vrot.slane %v2826_v10, 2  ;;  %v427_v18 = vrot.slane %v2826_v10, 1  ;;  %v481_v19 = vrot.slane %v2826_v10, 3  ;;  %v429_v20 = vrot.slane %v2828_v11, 1  ;;  %636 = vmatprep.subr.bf16.mxu0 %v2663_v0  ;;  %2360 = vmatprep.subr.bf16.mxu1 %v2663_v0 }
  0x27   : > { %v2846_v21 = vshll.u32 %v2826_v10, 16  ;;  %v2849_v22 = vshrl.u32 %v2826_v10, 16  ;;  %v2852_v23 = vshll.u32 %v2828_v11, 16  ;;  %v457_v26 = vrot.slane %v2828_v11, 2 }
  0x28   : > { %v456_v24 = vsel %vm453_vm0, %v454_v13, %v455_v17  ;;  %v428_v25 = vsel %vm425_vm1, %v426_v14, %v427_v18  ;;  %v482_v28 = vsel %vm3232_vm2, %v480_v15, %v481_v19  ;;  %v430_v29 = vsel %vm425_vm1, %v427_v18, %v429_v20 }
  0x29   : > { %459 = vrot.lane.b32.xlu1 %v456_v24, %s2664_s11  ;;  %431 = vrot.lane.b32.xlu0 %v428_v25, %s2665_s25  ;;  %v408_v30 = vrot.slane %v2846_v21, 1  ;;  %v401_v31 = vshll.u32 %v2824_v8, 16  ;;  %v416_v32 = vrot.slane %v2852_v23, 1  ;;  %v436_v33 = vrot.slane %v2837_v16, 1 }
  0x2a   : > { %v439_v34 = vrot.slane %v2849_v22, 1  ;;  %v440_v35 = vrot.slane %v2846_v21, 2  ;;  %v464_v39 = vrot.slane %v2837_v16, 2  ;;  %v467_v42 = vrot.slane %v2849_v22, 2  ;;  %637 = vmatpush1.bf16.msra.mxu0 %v2536_v40  ;;  %2369 = vmatpush1.bf16.msra.mxu1 %v2536_v40 }
  0x2b   : > { %v412_v36 = vor.u32 %v2849_v22, %v408_v30  ;;  %v437_v37 = vrot.slane %v401_v31, 2  ;;  %v403_v38 = vrot.slane %v401_v31, 1  ;;  %v465_v41 = vrot.slane %v401_v31, 3  ;;  %638 = vmatprep.subr.bf16.mxu0 %v2663_v0  ;;  %2361 = vmatprep.subr.bf16.mxu1 %v2663_v0 }
  0x2c   : > { %v468_v43 = vrot.slane %v2846_v21, 3  ;;  %v2881_v44 = vshrl.u32 %v2828_v11, 16  ;;  %v458_v45 = vsel %vm453_vm0, %v455_v17, %v457_v26  ;;  %v441_v46 = vor.u32 %v440_v35, %v439_v34 }
  0x2d   : > { %485 = vrot.lane.b32.xlu1 %v482_v28, %s2666_s30  ;;  %433 = vrot.lane.b32.xlu0 %v430_v29, %s2665_s25  ;;  %v446_v47 = vrot.slane %v2852_v23, 2  ;;  %v417_v48 = vsel %vm3231_vm3, %v412_v36, %v416_v32  ;;  %v438_v49 = vor.u32 %v437_v37, %v436_v33  ;;  %v404_v50 = vor.u32 %v403_v38, %v2837_v16  ;;  %s2669_s25 = smov 80  }
  0x2e   : > { %v445_v51 = vrot.slane %v2881_v44, 1  ;;  %v466_v52 = vor.u32 %v465_v41, %v464_v39  ;;  %v469_v53 = vor.u32 %v468_v43, %v467_v42  ;;  %v490_v54 = vrot.slane %v2837_v16, 3  ;;  %639 = vmatpush1.bf16.msra.mxu0 %v2537_v55  ;;  %2370 = vmatpush1.bf16.msra.mxu1 %v2537_v55  ;;  %v2539_v16 = vld [vmem:[%s3212_s1 + $0x40] sm:$0xff]  }
  0x2f   : > { %v491_v57 = vrot.slane %v401_v31, 4  ;;  %v493_v58 = vrot.slane %v2849_v22, 3  ;;  %v494_v59 = vrot.slane %v2846_v21, 4  ;;  %v442_v60 = vsel %vm3230_vm4, %v438_v49, %v441_v46  ;;  %640 = vmatprep.subr.bf16.mxu0 %v2663_v0  ;;  %2362 = vmatprep.subr.bf16.mxu1 %v2663_v0  ;;  %v2123_v49 = vld [vmem:[%s3215_s4 + $0x4] sm:$0xf] }
  0x30   : > { %v447_v56 = vor.u32 %v446_v47, %v445_v51  ;;  %v409_v61 = vsel %vm3231_vm3, %v404_v50, %v408_v30  ;;  %v471_v62 = vrot.slane %v2881_v44, 2  ;;  %v472_v63 = vrot.slane %v2852_v23, 3  ;;  %v2952_v51 = vld [vmem:[%s3215_s4] sm:$0xf] }
  0x31   : > { %420 = vrot.lane.b32.xlu1 %v417_v48, %s2667_s22  ;;  %461 = vrot.lane.b32.xlu0 %v458_v45, %s2664_s11  ;;  %v470_v1 = vsel %vm3229_vm5, %v466_v52, %v469_v53  ;;  %v506_v3 = vrot.slane %v2824_v8, 4  ;;  %v492_v5 = vor.u32 %v491_v57, %v490_v54  ;;  %v497_v6 = vrot.slane %v2881_v44, 3  ;;  %v2113_v52 = vld [vmem:[%s3213_s2] ss:$0 sm:$0xff]  ;;  %s2112_s11 = sadd.s32 4294967288, %s2100_s24 }
  0x32   : > { %v448_v4 = vsel %vm3230_vm4, %v441_v46, %v447_v56  ;;  %v507_v7 = vrot.slane %v2826_v10, 4  ;;  %v495_v9 = vor.u32 %v494_v59, %v493_v58  ;;  %v473_v12 = vor.u32 %v472_v63, %v471_v62  ;;  %641 = vmatpush1.bf16.msra.mxu0 %v2538_v2  ;;  %2371 = vmatpush1.bf16.msra.mxu1 %v2538_v2  ;;  %v2114_v54 = vld [vmem:[%s3214_s3] ss:$0 sm:$0xff] }
  0x33   : > { %v498_v13 = vrot.slane %v2852_v23, 4  ;;  %v509_v14 = vrot.slane %v2828_v11, 4  ;;  %v483_v21 = vrot.slane %v2828_v11, 3  ;;  %642 = vmatprep.subr.bf16.mxu0 %v2663_v0  ;;  %2363 = vmatprep.subr.bf16.mxu1 %v2663_v0  ;;  %v2671_v48 = vmov 0.0  }
  0x34   : > { %v508_v15 = vsel %vm505_vm6, %v506_v3, %v507_v7  ;;  %v496_v18 = vsel %vm3228_vm7, %v492_v5, %v495_v9  ;;  %v474_v20 = vsel %vm3229_vm5, %v469_v53, %v473_v12  ;;  %v785_v50 = vsel %vm505_vm6, %v2123_v49, 0 }
  0x35   : > { %449 = vrot.lane.b32.xlu1 %v442_v60, %s2668_s23  ;;  %418 = vrot.lane.b32.xlu0 %v409_v61, %s2667_s22  ;;  %v510_v17 = vsel %vm505_vm6, %v507_v7, %v509_v14  ;;  %v499_v22 = vor.u32 %v498_v13, %v497_v6  ;;  %v484_v23 = vsel %vm3232_vm2, %v481_v19, %v483_v21  ;;  %v722_v55 = vlaneseq  ;;  %s374_s22 = sand.u32 1, %s2637_s14  }
  0x36   : > { %2110 = vmatprep.mubr.msk.bf16.mxu0 %vm3227_vm8, %v508_v15  ;;  %2111 = vmatprep.mubr.msk.bf16.mxu1 %vm3227_vm8, %v510_v17  ;;  %s2098_s18 = sshll.u32 %s374_s22, 4 }
  0x37   : > { %643 = vmatpush1.bf16.msra.mxu0 %v2539_v16  ;;  %v500_v24 = vsel %vm3228_vm7, %v495_v9, %v499_v22  ;;  %2372 = vmatpush1.bf16.msra.mxu1 %v2539_v16  ;;  %v2963_v62 = vshrl.u32 %v722_v55, 7  ;;  %v727_v9 = vstv %s2112_s11  ;;  %s376_s11 = scalar_lea.vmem [#allocation2], %s2098_s18  ;;  %s2571_s18 = sshll.u32 %s2673_s21, 4  ;;  %s2572_s18 = int_to_ptr.vmem [resolvable:$false] %s2571_s18 }
  0x38   : > { %2301 = vmatprep.subr.bf16.mxu0 %v2671_v48  ;;  %2437 = vmatprep.subr.msk.bf16.mxu1 %vm505_vm6, %v2123_v49 }
  0x39   : > { %475 = vrot.lane.b32.xlu1 %v470_v1, %s2669_s25  ;;  %451 = vrot.lane.b32.xlu0 %v448_v4, %s2668_s23  ;;  %v2968_v12 = vadd.s32 8, %v2963_v62  ;;  %s2149_s23 = sadd.s32 4294967292, %s2100_s24 }
  0x3b   : > { %v729_v21 = vadd.s32 %v727_v9, %v2968_v12 }
  0x3d   : > { %501 = vrot.lane.b32.xlu1 %v496_v18, %s2670_s28  ;;  %477 = vrot.lane.b32.xlu0 %v474_v20, %s2669_s25  ;;  %v728_v20 = vadd.s32 %v727_v9, %v2963_v62  ;;  %s2008_s25 = sshll.u32 %s376_s11, 4  ;;  %s3150_s25 = int_to_ptr.vmem [resolvable:$true] %s2008_s25 }
  0x3e   : > { %s2567_s12 = scalar_lea.vmem %s3150_s25, 256  ;;  %p2574_p4 = scmp.lt.s32.totalorder %s3150_s25, %s2572_s18 }
  0x3f   : > { %vm732_vm15 = vcmp.ge.s32.totalorder %v728_v20, 0  ;;  %p2568_p0 = scmp.ne.s32.totalorder %s3150_s25, %s2567_s12 }
  0x41   : > { %487 = vrot.lane.b32.xlu0 %v484_v23, %s2666_s30  ;;  %503 = vrot.lane.b32.xlu1 %v500_v24, %s2670_s28  ;;  %v2973_v23 = vadd.s32 16, %v2963_v62  ;;  %s3159_s30 = scalar_lea.sflag [#allocation3], %s374_s22  ;;  %p2569_p1 = pnand %p2568_p0, %p2782_p3 }
  0x43   : > { %p2570_p2 = pneg %p2569_p1 }
  0x9b   : > { %v460_v11 = vpop.permute.xlu1 %459  ;;  %v432_v25 = vpop.permute.xlu0 %431 }
  0x9f   : > { %v486_v26 = vpop.permute.xlu1 %485  ;;  %v434_v0 = vpop.permute.xlu0 %433 }
  0xa3   : > { %v421_v27 = vpop.permute.xlu1 %420  ;;  %v462_v28 = vpop.permute.xlu0 %461 }
  0xa4   : > { %v515_v33 = vsel %vm3227_vm8, %v2826_v10, %v421_v27 }
  0xa5   : > { %v520_v38 = vsel %vm3226_vm10, %v515_v33, %v434_v0 }
  0xa7   : > { %v450_v29 = vpop.permute.xlu1 %449  ;;  %v419_v30 = vpop.permute.xlu0 %418 }
  0xa8   : > { %v513_v31 = vsel %vm3227_vm8, %v2824_v8, %v419_v30 }
  0xa9   : > { %v518_v19 = vsel %vm3226_vm10, %v513_v31, %v432_v25 }
  0xaa   : > { %v523_v32 = vsel %vm521_vm9, %v518_v19, %v450_v29 }
  0xab   : > { %v476_v34 = vpop.permute.xlu1 %475  ;;  %v528_v35 = vsel %vm526_vm11, %v523_v32, %v460_v11  ;;  %v452_v36 = vpop.permute.xlu0 %451  ;;  %v726_v11 = vadd.s32 24, %v2963_v62 }
  0xac   : > { %v533_v37 = vsel %vm531_vm12, %v528_v35, %v476_v34  ;;  %v525_v39 = vsel %vm521_vm9, %v520_v38, %v452_v36  ;;  %vm736_vm9 = vcmp.lt.s32.totalorder %v728_v20, 32 }
  0xad   : > { %v538_v41 = vsel %vm536_vm13, %v533_v37, %v486_v26  ;;  %v530_v43 = vsel %vm526_vm11, %v525_v39, %v462_v28  ;;  %vm733_vm11 = vcmp.ge.s32.totalorder %v729_v21, 0  ;;  %v730_v26 = vadd.s32 %v727_v9, %v2973_v23 }
  0xae   : > { %v731_v0 = vadd.s32 %v727_v9, %v726_v11 }
  0xaf   : > { %v502_v8 = vpop.permute.xlu1 %501  ;;  %v478_v40 = vpop.permute.xlu0 %477  ;;  %vm734_vm10 = vcmp.ge.s32.totalorder %v730_v26, 0  ;;  %vm738_vm8 = vcmp.lt.s32.totalorder %v730_v26, 32 }
  0xb0   : > { %v543_v42 = vsel %vm541_vm14, %v538_v41, %v502_v8  ;;  %v535_v10 = vsel %vm531_vm12, %v530_v43, %v478_v40  ;;  %vm737_vm12 = vcmp.lt.s32.totalorder %v729_v21, 32  ;;  %vm735_vm5 = vcmp.ge.s32.totalorder %v731_v0, 0  ;;  %vm742_vm2 = vmand %vm734_vm10, %vm738_vm8 }
  0xb1   : > { %659 = vmatmul.mubr.bf16.vlgmr.msra.gmra.mrb[0].mxu0 %v543_v42  ;;  %vm739_vm4 = vcmp.lt.s32.totalorder %v731_v0, 32  ;;  %v2121_v39 = vsel %vm742_vm2, 1.0, %v2671_v48  ;;  %vm776_vm8 = vcmask 64512   ;;  %vm3240_vm2 = vcmask 1044480  }
  0xb2   : > { %vm3244_vm10 = vsmask.f32 4352 }
  0xb3   : > { %v488_v44 = vpop.permute.xlu0 %487  ;;  %v504_v45 = vpop.permute.xlu1 %503 }
  0xb4   : > { %v540_v46 = vsel %vm536_vm13, %v535_v10, %v488_v44  ;;  %vm740_vm13 = vmand %vm732_vm15, %vm736_vm9 }
  0xb5   : > { %v546_v47 = vsel %vm541_vm14, %v540_v46, %v504_v45  ;;  %vm741_vm14 = vmand %vm733_vm11, %vm737_vm12  ;;  %v2119_v31 = vsel %vm740_vm13, 1.0, %v2671_v48  ;;  %vm2672_vm11 = vmmov 0  }
  0xb6   : > { %667 = vmatmul.mubr.bf16.vlgmr.msra.gmra.mrb[0].mxu1 %v546_v47  ;;  %v2120_v32 = vsel %vm741_vm14, 1.0, %v2671_v48  ;;  %vm743_vm15 = vmand %vm735_vm5, %vm739_vm4  ;;  %v840_v47 = vsel %vm505_vm6, %v2952_v51, 0  ;;  %vm3242_vm4 = vsmask.f32 6400  ;;  %vm3243_vm5 = vsmask.f32 5376  ;;  %2303 = vmatprep.mubr.msk.bf16.mxu0 %vm2672_vm11, %v2671_v48 }
  0xb7   : > { %2248 = vmatpush3.bf16.msra.mxu1 %v785_v50  ;;  %v2122_v42 = vsel %vm743_vm15, 1.0, %v2671_v48 }
  0xb8   : > { %2438 = vmatprep.subr.msk.bf16.mxu1 %vm505_vm6, %v2952_v51 }
 0x184   : > { %v660_v53 = vpop.f32.mrb[0].mxu0 }
 0x185   : > { %v683_v56 = vmul.f32 %v2113_v52, %v660_v53  ;;  %v662_v57 = vpop.f32.mrb[1].mxu0 }
 0x186   : > { %v663_v58 = vpop.f32.mrb[2].mxu0 }
 0x187   : > { %v694_v59 = vadd.f32 %v2114_v54, %v683_v56  ;;  %v684_v60 = vmul.f32 %v2113_v52, %v663_v58  ;;  %v665_v61 = vpop.f32.mrb[3].mxu0 }
 0x189   : > { %v702_v63 = vmin.f32 %v694_v59, 0.0  ;;  %v695_v1 = vadd.f32 %v2114_v54, %v684_v60  ;;  %v668_v2 = vpop.f32.mrb[0].mxu1  ;;  %vm698_vm7 = vcmp.gt.f32.partialorder %v694_v59, 0.0 }
 0x18a   : > { %v685_v3 = vmul.f32 %v2113_v52, %v668_v2  ;;  %v670_v4 = vpop.f32.mrb[1].mxu1 }
 0x18b   : > { %v706_v5 = vmul.f32 1.442695, %v702_v63  ;;  %v703_v6 = vmin.f32 %v695_v1, 0.0  ;;  %v671_v7 = vpop.f32.mrb[2].mxu1  ;;  %vm699_vm3 = vcmp.gt.f32.partialorder %v695_v1, 0.0 }
 0x18c   : > { %v696_v13 = vadd.f32 %v2114_v54, %v685_v3  ;;  %v686_v14 = vmul.f32 %v2113_v52, %v671_v7  ;;  %v673_v15 = vpop.f32.mrb[3].mxu1 }
 0x18d   : > { %2549 = vpow2.f32 %v706_v5  ;;  %v708_v16 = vmul.f32 1.442695, %v703_v6 }
 0x18e   : > { %v704_v17 = vmin.f32 %v696_v13, 0.0  ;;  %v697_v18 = vadd.f32 %v2114_v54, %v686_v14  ;;  %vm700_vm9 = vcmp.gt.f32.partialorder %v696_v13, 0.0 }
 0x18f   : > { %2551 = vpow2.f32 %v708_v16 }
 0x190   : > { %v710_v22 = vmul.f32 1.442695, %v704_v17  ;;  %v705_v24 = vmin.f32 %v697_v18, 0.0 }
 0x192   : > { %2553 = vpow2.f32 %v710_v22  ;;  %v712_v25 = vmul.f32 1.442695, %v705_v24 }
 0x194   : > { %2555 = vpow2.f32 %v712_v25  ;;  %v2128_v25 = vld [vmem:[%s3215_s4 + $0x8] sm:$0xf] }
 0x197   : > { %v2550_v27 = vpop.eup %2549 }
 0x198   : > { %v2115_v28 = vadd.f32 -1.0, %v2550_v27 }
 0x199   : > { %v2552_v29 = vpop.eup %2551 }
 0x19a   : > { %v718_v30 = vsel %vm698_vm7, %v694_v59, %v2115_v28  ;;  %v2116_v19 = vadd.f32 -1.0, %v2552_v29  ;;  %vm701_vm7 = vcmp.gt.f32.partialorder %v697_v18, 0.0 }
 0x19b   : > { %v752_v35 = vmul.f32 %v2119_v31, %v718_v30 }
 0x19c   : > { %v2554_v33 = vpop.eup %2553  ;;  %v719_v34 = vsel %vm699_vm3, %v695_v1, %v2116_v19  ;;  %vm3241_vm3 = vsmask.f32 7424 }
 0x19d   : > { %v753_v36 = vmul.f32 %v2120_v32, %v719_v34  ;;  %v2117_v37 = vadd.f32 -1.0, %v2554_v33  ;;  %v904_v32 = vsel %vm505_vm6, %v2128_v25, 0  ;;  %v2131_v33 = vld [vmem:[%s3215_s4 + $0xc] sm:$0xf] }
 0x19e   : > { %v2556_v38 = vpop.eup %2555  ;;  %v973_v34 = vsel %vm505_vm6, %v2131_v33, 0 }
 0x19f   : > { %v756_v8 = vpack.c.bf16 %v753_v36, %v752_v35  ;;  %v720_v40 = vsel %vm700_vm9, %v696_v13, %v2117_v37  ;;  %v2118_v41 = vadd.f32 -1.0, %v2556_v38  ;;  %v2134_v35 = vld [vmem:[%s3215_s4 + $0x10] sm:$0xf]  ;;  %v2137_v37 = vld [vmem:[%s3215_s4 + $0x14] sm:$0xf] }
 0x1a0   : > { %v754_v45 = vmul.f32 %v2121_v39, %v720_v40  ;;  %v1038_v36 = vsel %vm505_vm6, %v2134_v35, 0  ;;  %v1107_v38 = vsel %vm505_vm6, %v2137_v37, 0  ;;  %v2140_v39 = vld [vmem:[%s3215_s4 + $0x18] sm:$0xf]  ;;  %v2143_v40 = vld [vmem:[%s3215_s4 + $0x1c] sm:$0xf] }
 0x1a1   : > { %v721_v43 = vsel %vm701_vm7, %v697_v18, %v2118_v41  ;;  %v762_v10 = vshrl.u32 %v756_v8, 16  ;;  %v764_v44 = vshll.u32 %v756_v8, 16  ;;  %v894_v49 = vrot.slane %v756_v8, 1 }
 0x1a2   : > { %v755_v46 = vmul.f32 %v2122_v42, %v721_v43  ;;  %v1028_v54 = vrot.slane %v756_v8, 2  ;;  %v1162_v56 = vrot.slane %v756_v8, 3  ;;  %v1296_v63 = vrot.slane %v756_v8, 4  ;;  %v2146_v42 = vld [vmem:[%s3215_s4 + $0x20] sm:$0xf] }
 0x1a3   : > { %v766_v50 = vrot.slane %v764_v44, 1  ;;  %v959_v52 = vrot.slane %v762_v10, 1  ;;  %v960_v53 = vrot.slane %v764_v44, 2  ;;  %v1227_v57 = vrot.slane %v762_v10, 3 }
 0x1a4   : > { %v2983_v55 = vpack.c.bf16 %v755_v46, %v754_v45  ;;  %v1228_v58 = vrot.slane %v764_v44, 4  ;;  %v1093_v60 = vrot.slane %v762_v10, 2  ;;  %v1094_v61 = vrot.slane %v764_v44, 3  ;;  %v2150_v44 = vld [vmem:[%s3216_s5] ss:$0 sm:$0xff] }
 0x1a5   : > { %v767_v59 = vor.u32 %v766_v50, %v762_v10  ;;  %v961_v4 = vor.u32 %v960_v53, %v959_v52  ;;  %v1241_v41 = vsel %vm505_vm6, %v2143_v40, 0  ;;  %v1306_v43 = vsel %vm505_vm6, %v2146_v42, 0  ;;  %v2540_v10 = vld [vmem:[%s3218_s7 + $0x8] sm:$0xff]   ;;  %v2151_v46 = vld [vmem:[%s3217_s6] ss:$0 sm:$0xff] }
 0x1a6   : > { %v769_v1 = vshll.u32 %v2983_v55, 16  ;;  %v773_v2 = vshrl.u32 %v2983_v55, 16  ;;  %v895_v51 = vrot.slane %v2983_v55, 1  ;;  %v1029_v3 = vrot.slane %v2983_v55, 2  ;;  %2302 = vmatpush3.bf16.msra.mxu0 %v2540_v10 }
 0x1a7   : > { %v1163_v5 = vrot.slane %v2983_v55, 3  ;;  %v1229_v6 = vor.u32 %v1228_v58, %v1227_v57  ;;  %v1297_v7 = vrot.slane %v2983_v55, 4  ;;  %v1095_v26 = vor.u32 %v1094_v61, %v1093_v60  ;;  %2307 = vmatprep.subr.bf16.mxu0 %v2671_v48 }
 0x1a8   : > { %v771_v9 = vrot.slane %v769_v1, 1  ;;  %v896_v13 = vsel %vm425_vm1, %v894_v49, %v895_v51  ;;  %v962_v14 = vrot.slane %v773_v2, 1  ;;  %v963_v15 = vrot.slane %v769_v1, 2 }
 0x1a9   : > { %v1030_v16 = vsel %vm453_vm0, %v1028_v54, %v1029_v3  ;;  %v1096_v17 = vrot.slane %v773_v2, 2  ;;  %v1097_v18 = vrot.slane %v769_v1, 3  ;;  %v1164_v20 = vsel %vm3240_vm2, %v1162_v56, %v1163_v5 }
 0x1aa   : > { %v772_v21 = vsel %vm3241_vm3, %v767_v59, %v771_v9  ;;  %v775_v22 = vor.u32 %v773_v2, %v771_v9  ;;  %v964_v24 = vor.u32 %v963_v15, %v962_v14  ;;  %v1230_v11 = vrot.slane %v773_v2, 3 }
 0x1ab   : > { %2249 = vmatprep.mubr.msk.bf16.mxu1 %vm776_vm8, %v772_v21  ;;  %v1098_v0 = vor.u32 %v1097_v18, %v1096_v17  ;;  %v1231_v27 = vrot.slane %v769_v1, 4  ;;  %v1298_v28 = vsel %vm505_vm6, %v1296_v63, %v1297_v7  ;;  %v1398_v61 = vstv %s2149_s23  ;;  %s2198_s23 = sshll.u32 %s2649_s17, 2 }
 0x1ac   : > { %2250 = vmatmul.mubr.msk.bf16.vlgmr.msra.gmra.mrb[4].mxu1 %vm776_vm8, %v775_v22  ;;  %v965_v29 = vsel %vm3242_vm4, %v961_v4, %v964_v24  ;;  %v1401_v2 = vadd.s32 %v1398_v61, %v2973_v23  ;;  %v1400_v4 = vadd.s32 %v1398_v61, %v2968_v12  ;;  %s2005_s24 = sadd.s32 %s2198_s23, %s2197_s19  ;;  %s2573_s19 = scalar_lea.vmem %s2572_s18, 512 }
 0x1ad   : > { %2254 = vmatpush3.bf16.msra.mxu1 %v840_v47  ;;  %2255 = vmatprep.mubr.msk.bf16.mxu1 %vm776_vm8, %v756_v8  ;;  %v1099_v30 = vsel %vm3243_vm5, %v1095_v26, %v1098_v0  ;;  %v1232_v31 = vor.u32 %v1231_v27, %v1230_v11  ;;  %v1172_v8 = vsel %vm505_vm6, %v2140_v39, 0  ;;  %s2199_s28 = sshll.u32 %s2005_s24, 7  ;;  %p2575_p5 = scmp.lt.s32.totalorder %s2573_s19, %s2567_s12 }
 0x1ae   : > { %2439 = vmatprep.subr.msk.bf16.mxu1 %vm505_vm6, %v2128_v25  ;;  %vm1404_vm12 = vcmp.ge.s32.totalorder %v1401_v2, 0  ;;  %vm1407_vm13 = vcmp.lt.s32.totalorder %v1401_v2, 32  ;;  %vm1403_vm7 = vcmp.ge.s32.totalorder %v1400_v4, 0  ;;  %v2542_v2 = vld [vmem:[%s3218_s7 + $0x10] sm:$0xff]   ;;  %s3156_s29 = scalar_lea.hbm %s3221_s10, %s2199_s28 }
 0x1af   : > { %v1233_v19 = vsel %vm3244_vm10, %v1229_v6, %v1232_v31  ;;  %vm1410_vm9 = vmand %vm1404_vm12, %vm1407_vm13  ;;  %vm3245_vm12 = vcmask 1044480   ;;  %vm3247_vm13 = vsmask.f32 6400  ;;  %p2576_p6 = por %p2575_p5, %p2574_p4 }
 0x1b0   : > { %v2157_v23 = vsel %vm1410_vm9, 1.0, %v2671_v48 }
 0x1b1   : > { %p2577_p7 = pnand %p2576_p6, %p2570_p2 }
 0x1b8   : > { %2256 = vmatmul.mubr.msk.bf16.vlgmr.msra.gmra.mrb[4].mxu1 %vm776_vm8, %v2983_v55 }
 0x1b9   : > { %2260 = vmatpush3.bf16.msra.mxu1 %v904_v32  ;;  %2261 = vmatprep.mubr.msk.bf16.mxu1 %vm776_vm8, %v896_v13 }
 0x1ba   : > { %2440 = vmatprep.subr.msk.bf16.mxu1 %vm505_vm6, %v2131_v33 }
 0x1c4   : > { %2262 = vmatmul.mubr.msk.bf16.vlgmr.msra.gmra.mrb[4].mxu1 %vm776_vm8, %v895_v51 }
 0x1c5   : > { %2266 = vmatpush3.bf16.msra.mxu1 %v973_v34  ;;  %2267 = vmatprep.mubr.msk.bf16.mxu1 %vm776_vm8, %v965_v29 }
 0x1c6   : > { %2441 = vmatprep.subr.msk.bf16.mxu1 %vm505_vm6, %v2134_v35 }
 0x1d0   : > { %2268 = vmatmul.mubr.msk.bf16.vlgmr.msra.gmra.mrb[4].mxu1 %vm776_vm8, %v964_v24 }
 0x1d1   : > { %2272 = vmatpush3.bf16.msra.mxu1 %v1038_v36  ;;  %2273 = vmatprep.mubr.msk.bf16.mxu1 %vm776_vm8, %v1030_v16 }
 0x1d2   : > { %2442 = vmatprep.subr.msk.bf16.mxu1 %vm505_vm6, %v2137_v37 }
 0x1dc   : > { %2274 = vmatmul.mubr.msk.bf16.vlgmr.msra.gmra.mrb[4].mxu1 %vm776_vm8, %v1029_v3  ;;  %v1399_v3 = vadd.s32 %v1398_v61, %v2963_v62 }
 0x1dd   : > { %2278 = vmatpush3.bf16.msra.mxu1 %v1107_v38  ;;  %2279 = vmatprep.mubr.msk.bf16.mxu1 %vm776_vm8, %v1099_v30 }
 0x1de   : > { %2443 = vmatprep.subr.msk.bf16.mxu1 %vm505_vm6, %v2140_v39  ;;  %vm1402_vm14 = vcmp.ge.s32.totalorder %v1399_v3, 0  ;;  %vm1405_vm15 = vcmp.lt.s32.totalorder %v1399_v3, 32  ;;  %v2544_v3 = vld [vmem:[%s3218_s7 + $0x20] sm:$0xff]  }
 0x1df   : > { %vm1408_vm2 = vmand %vm1402_vm14, %vm1405_vm15  ;;  %vm3249_vm14 = vsmask.f32 5376  ;;  %vm3250_vm15 = vsmask.f32 4352 }
 0x1e0   : > { %v2155_v12 = vsel %vm1408_vm2, 1.0, %v2671_v48 }
 0x1e8   : > { %2280 = vmatmul.mubr.msk.bf16.vlgmr.msra.gmra.mrb[4].mxu1 %vm776_vm8, %v1098_v0 }
 0x1e9   : > { %2284 = vmatpush3.bf16.msra.mxu1 %v1172_v8  ;;  %2285 = vmatprep.mubr.msk.bf16.mxu1 %vm776_vm8, %v1164_v20 }
 0x1ea   : > { %2444 = vmatprep.subr.msk.bf16.mxu1 %vm505_vm6, %v2143_v40 }
 0x1f4   : > { %2286 = vmatmul.mubr.msk.bf16.vlgmr.msra.gmra.mrb[4].mxu1 %vm776_vm8, %v1163_v5 }
 0x1f5   : > { %2290 = vmatpush3.bf16.msra.mxu1 %v1241_v41  ;;  %2291 = vmatprep.mubr.msk.bf16.mxu1 %vm776_vm8, %v1233_v19 }
 0x1f6   : > { %2445 = vmatprep.subr.msk.bf16.mxu1 %vm505_vm6, %v2146_v42 }
 0x200   : > { %2292 = vmatmul.mubr.msk.bf16.vlgmr.msra.gmra.mrb[4].mxu1 %vm776_vm8, %v1232_v31 }
 0x201   : > { %2296 = vmatpush3.bf16.msra.mxu1 %v1306_v43  ;;  %2297 = vmatprep.mubr.msk.bf16.mxu1 %vm776_vm8, %v1298_v28 }
 0x20c   : > { %2298 = vmatmul.mubr.msk.bf16.vlgmr.msra.gmra.mrb[4].mxu1 %vm776_vm8, %v1297_v7  ;;  %vm1406_vm8 = vcmp.lt.s32.totalorder %v1400_v4, 32  ;;  %v2545_v4 = vld [vmem:[%s3218_s7 + $0x28] sm:$0xff]  }
 0x20d   : > { %vm1409_vm3 = vmand %vm1403_vm7, %vm1406_vm8 }
 0x20e   : > { %v2156_v17 = vsel %vm1409_vm3, 1.0, %v2671_v48 }
 0x2df   : > { %v2299_v45 = vpop.f32.mrb[4].mxu1 }
 0x2e0   : > { %v1369_v47 = vmul.f32 %v2299_v45, %v2150_v44  ;;  %v1342_v49 = vpop.f32.mrb[5].mxu1 }
 0x2e1   : > { %v1367_v50 = vmul.f32 %v2150_v44, %v1342_v49  ;;  %v2300_v52 = vpop.f32.mrb[6].mxu1 }
 0x2e2   : > { %v1379_v53 = vadd.f32 %v2151_v46, %v1369_v47  ;;  %v1345_v54 = vpop.f32.mrb[7].mxu1  ;;  %v2541_v47 = vld [vmem:[%s3218_s7] sm:$0xff]  }
 0x2e3   : > { %v1377_v55 = vadd.f32 %v2151_v46, %v1367_v50  ;;  %v1368_v56 = vmul.f32 %v2150_v44, %v1345_v54 }
 0x2e4   : > { %v1385_v57 = vmin.f32 %v1379_v53, 0.0  ;;  %vm1382_vm4 = vcmp.gt.f32.partialorder %v1379_v53, 0.0 }
 0x2e5   : > { %v1383_v58 = vmin.f32 %v1377_v55, 0.0  ;;  %v1378_v59 = vadd.f32 %v2151_v46, %v1368_v56  ;;  %vm1380_vm5 = vcmp.gt.f32.partialorder %v1377_v55, 0.0 }
 0x2e6   : > { %v1390_v60 = vmul.f32 1.442695, %v1385_v57 }
 0x2e7   : > { %v1386_v63 = vmul.f32 1.442695, %v1383_v58  ;;  %v1384_v1 = vmin.f32 %v1378_v59, 0.0  ;;  %vm1381_vm10 = vcmp.gt.f32.partialorder %v1378_v59, 0.0 }
 0x2e8   : > { %2557 = vpow2.f32 %v1390_v60 }
 0x2e9   : > { %2559 = vpow2.f32 %v1386_v63  ;;  %v1388_v51 = vmul.f32 1.442695, %v1384_v1 }
 0x2eb   : > { %2561 = vpow2.f32 %v1388_v51  ;;  %v2543_v51 = vld [vmem:[%s3218_s7 + $0x18] sm:$0xff]  }
 0x2f2   : > { %v2558_v5 = vpop.eup %2557 }
 0x2f3   : > { %v2560_v6 = vpop.eup %2559  ;;  %v2154_v7 = vadd.f32 -1.0, %v2558_v5  ;;  %v2546_v5 = vld [vmem:[%s3218_s7 + $0x30] sm:$0xff]  }
 0x2f4   : > { %v2152_v9 = vadd.f32 -1.0, %v2560_v6  ;;  %v2547_v6 = vld [vmem:[%s3218_s7 + $0x38] sm:$0xff]  }
 0x2f5   : > { %v2562_v62 = vpop.eup %2561  ;;  %v1397_v13 = vsel %vm1382_vm4, %v1379_v53, %v2154_v7  ;;  %v2548_v7 = vld [vmem:[%s3218_s7 + $0x40] sm:$0xff]  }
 0x2f6   : > { %v1419_v14 = vmul.f32 %v2157_v23, %v1397_v13  ;;  %v1395_v15 = vsel %vm1380_vm5, %v1377_v55, %v2152_v9  ;;  %v2153_v16 = vadd.f32 -1.0, %v2562_v62  ;;  %v2192_v23 = vld [vmem:[%s3219_s8] ss:$0 sm:$0xff] }
 0x2f7   : > { %v1417_v21 = vmul.f32 %v2155_v12, %v1395_v15  ;;  %v2193_v62 = vld [vmem:[%s3220_s9] ss:$0 sm:$0xff] }
 0x2f8   : > { %v1421_v18 = vpack.c.bf16 %v1419_v14, %v1419_v14  ;;  %v1396_v20 = vsel %vm1381_vm10, %v1378_v59, %v2153_v16  ;;  %vm3259_vm10 = vcmask 261120  }
 0x2f9   : > { %v1418_v22 = vmul.f32 %v2156_v17, %v1396_v20 }
 0x2fa   : > { %v1435_v24 = vshll.u32 %v1421_v18, 16  ;;  %v1544_v11 = vrot.slane %v1421_v18, 1  ;;  %v1604_v25 = vshrl.u32 %v1421_v18, 16  ;;  %v1666_v0 = vrot.slane %v1421_v18, 2 }
 0x2fb   : > { %v1420_v26 = vpack.c.bf16 %v1418_v22, %v1417_v21  ;;  %v1786_v27 = vrot.slane %v1421_v18, 3  ;;  %v1906_v28 = vrot.slane %v1421_v18, 4 }
 0x2fc   : > { %v1437_v29 = vrot.slane %v1435_v24, 1  ;;  %v1606_v30 = vrot.slane %v1604_v25, 1  ;;  %v1607_v31 = vrot.slane %v1435_v24, 2  ;;  %v1726_v19 = vrot.slane %v1604_v25, 2 }
 0x2fd   : > { %v1428_v32 = vshrl.u32 %v1420_v26, 16  ;;  %v1430_v33 = vshll.u32 %v1420_v26, 16  ;;  %v1543_v34 = vrot.slane %v1420_v26, 1  ;;  %v1665_v35 = vrot.slane %v1420_v26, 2 }
 0x2fe   : > { %v1608_v36 = vor.u32 %v1607_v31, %v1606_v30  ;;  %v1727_v37 = vrot.slane %v1435_v24, 3  ;;  %v1785_v38 = vrot.slane %v1420_v26, 3  ;;  %v1846_v39 = vrot.slane %v1604_v25, 3 }
 0x2ff   : > { %v1432_v8 = vrot.slane %v1430_v33, 1  ;;  %v1545_v40 = vsel %vm425_vm1, %v1543_v34, %v1544_v11  ;;  %v1601_v41 = vrot.slane %v1428_v32, 1  ;;  %v1602_v42 = vrot.slane %v1430_v33, 2 }
 0x300   : > { %v1667_v43 = vsel %vm453_vm0, %v1665_v35, %v1666_v0  ;;  %v1723_v10 = vrot.slane %v1428_v32, 2  ;;  %v1724_v44 = vrot.slane %v1430_v33, 3  ;;  %v1728_v45 = vor.u32 %v1727_v37, %v1726_v19 }
 0x301   : > { %v1433_v46 = vor.u32 %v1432_v8, %v1428_v32  ;;  %v1603_v49 = vor.u32 %v1602_v42, %v1601_v41  ;;  %v1787_v50 = vsel %vm3245_vm12, %v1785_v38, %v1786_v27  ;;  %v1843_v52 = vrot.slane %v1428_v32, 3 }
 0x302   : > { %v1725_v53 = vor.u32 %v1724_v44, %v1723_v10  ;;  %v1844_v54 = vrot.slane %v1430_v33, 4  ;;  %v1847_v55 = vrot.slane %v1435_v24, 4  ;;  %v1905_v56 = vrot.slane %v1420_v26, 4 }
 0x303   : > { %vm3246_vm1 = vsmask.f32 7424  ;;  %v1609_v58 = vsel %vm3247_vm13, %v1603_v49, %v1608_v36  ;;  %vm3248_vm0 = vcmask 130048  }
 0x304   : > { %v1438_v57 = vsel %vm3246_vm1, %v1433_v46, %v1437_v29  ;;  %v1729_v59 = vsel %vm3249_vm14, %v1725_v53, %v1728_v45  ;;  %v1845_v60 = vor.u32 %v1844_v54, %v1843_v52  ;;  %v1848_v61 = vor.u32 %v1847_v55, %v1846_v39  ;;  %vm3251_vm9 = vmmov %vm3248_vm0 }
 0x305   : > { %2304 = vmatmul.mubr.msk.bf16.vlgmr.msra.gmra.mrb[4].mxu0 %vm3248_vm0, %v1438_v57  ;;  %v1907_v63 = vsel %vm505_vm6, %v1905_v56, %v1906_v28  ;;  %vm3252_vm6 = vmmov %vm3248_vm0 }
 0x306   : > { %2308 = vmatpush3.bf16.msra.mxu0 %v2541_v47  ;;  %2309 = vmatprep.mubr.msk.bf16.mxu0 %vm2672_vm11, %v2671_v48  ;;  %v1849_v1 = vsel %vm3250_vm15, %v1845_v60, %v1848_v61  ;;  %vm3253_vm7 = vmmov %vm3248_vm0 }
 0x307   : > { %2313 = vmatprep.subr.bf16.mxu0 %v2671_v48  ;;  %vm3254_vm8 = vmmov %vm3248_vm0 }
 0x308   : > { %vm3255_vm2 = vmmov %vm3248_vm0 }
 0x309   : > { %vm3256_vm3 = vmmov %vm3248_vm0 }
 0x30a   : > { %vm3257_vm4 = vmmov %vm3248_vm0 }
 0x30b   : > { %vm3258_vm5 = vmmov %vm3248_vm0 }
 0x30c   : > { %vm3260_vm1 = vmmov %vm3259_vm10 }
 0x311   : > { %2310 = vmatmul.mubr.msk.bf16.vlgmr.msra.gmra.mrb[4].mxu0 %vm3251_vm9, %v1420_v26 }
 0x312   : > { %2314 = vmatpush3.bf16.msra.mxu0 %v2542_v2  ;;  %2315 = vmatprep.mubr.msk.bf16.mxu0 %vm2672_vm11, %v2671_v48 }
 0x313   : > { %2319 = vmatprep.subr.bf16.mxu0 %v2671_v48 }
 0x31d   : > { %2316 = vmatmul.mubr.msk.bf16.vlgmr.msra.gmra.mrb[4].mxu0 %vm3252_vm6, %v1545_v40 }
 0x31e   : > { %2320 = vmatpush3.bf16.msra.mxu0 %v2543_v51  ;;  %2321 = vmatprep.mubr.msk.bf16.mxu0 %vm2672_vm11, %v2671_v48 }
 0x31f   : > { %2325 = vmatprep.subr.bf16.mxu0 %v2671_v48 }
 0x329   : > { %2322 = vmatmul.mubr.msk.bf16.vlgmr.msra.gmra.mrb[4].mxu0 %vm3253_vm7, %v1609_v58 }
 0x32a   : > { %2326 = vmatpush3.bf16.msra.mxu0 %v2544_v3  ;;  %2327 = vmatprep.mubr.msk.bf16.mxu0 %vm2672_vm11, %v2671_v48 }
 0x32b   : > { %2331 = vmatprep.subr.bf16.mxu0 %v2671_v48 }
 0x335   : > { %2328 = vmatmul.mubr.msk.bf16.vlgmr.msra.gmra.mrb[4].mxu0 %vm3254_vm8, %v1667_v43 }
 0x336   : > { %2332 = vmatpush3.bf16.msra.mxu0 %v2545_v4  ;;  %2333 = vmatprep.mubr.msk.bf16.mxu0 %vm2672_vm11, %v2671_v48 }
 0x337   : > { %2337 = vmatprep.subr.bf16.mxu0 %v2671_v48 }
 0x341   : > { %2334 = vmatmul.mubr.msk.bf16.vlgmr.msra.gmra.mrb[4].mxu0 %vm3255_vm2, %v1729_v59 }
 0x342   : > { %2338 = vmatpush3.bf16.msra.mxu0 %v2546_v5  ;;  %2339 = vmatprep.mubr.msk.bf16.mxu0 %vm2672_vm11, %v2671_v48 }
 0x343   : > { %2343 = vmatprep.subr.bf16.mxu0 %v2671_v48 }
 0x34d   : > { %2340 = vmatmul.mubr.msk.bf16.vlgmr.msra.gmra.mrb[4].mxu0 %vm3256_vm3, %v1787_v50 }
 0x34e   : > { %2344 = vmatpush3.bf16.msra.mxu0 %v2547_v6  ;;  %2345 = vmatprep.mubr.msk.bf16.mxu0 %vm2672_vm11, %v2671_v48 }
 0x34f   : > { %2349 = vmatprep.subr.bf16.mxu0 %v2671_v48 }
 0x359   : > { %2346 = vmatmul.mubr.msk.bf16.vlgmr.msra.gmra.mrb[4].mxu0 %vm3257_vm4, %v1849_v1 }
 0x35a   : > { %2350 = vmatpush3.bf16.msra.mxu0 %v2548_v7  ;;  %2351 = vmatprep.mubr.msk.bf16.mxu0 %vm2672_vm11, %v2671_v48 }
 0x365   : > { %2352 = vmatmul.mubr.msk.bf16.vlgmr.msra.gmra.mrb[4].mxu0 %vm3258_vm5, %v1907_v63 }
 0x438   : > { %v1951_v9 = vpop.f32.mrb[4].mxu0 }
 0x439   : > { %v1967_v13 = vmul.f32 %v2192_v23, %v1951_v9  ;;  %v2353_v12 = vpop.f32.mrb[5].mxu0 }
 0x43a   : > { %v1954_v14 = vpop.f32.mrb[6].mxu0 }
 0x43b   : > { %v1976_v15 = vadd.f32 %v2193_v62, %v1967_v13  ;;  %v1968_v16 = vmul.f32 %v2192_v23, %v1954_v14  ;;  %v2354_v48 = vpop.f32.mrb[7].mxu0 }
 0x43d   : > { %v1980_v17 = vmin.f32 %v1976_v15, 0.0  ;;  %v1977_v18 = vadd.f32 %v2193_v62, %v1968_v16  ;;  %vm1978_vm11 = vcmp.gt.f32.partialorder %v1976_v15, 0.0 }
 0x43f   : > { %v1982_v20 = vmul.f32 1.442695, %v1980_v17  ;;  %v1981_v21 = vmin.f32 %v1977_v18, 0.0  ;;  %vm1979_vm12 = vcmp.gt.f32.partialorder %v1977_v18, 0.0 }
 0x441   : > { %2563 = vpow2.f32 %v1982_v20  ;;  %v1984_v22 = vmul.f32 1.442695, %v1981_v21 }
 0x443   : > { %2565 = vpow2.f32 %v1984_v22 }
 0x44b   : > { %v2564_v24 = vpop.eup %2563 }
 0x44c   : > { %v2194_v11 = vadd.f32 -1.0, %v2564_v24 }
 0x44d   : > { %v2566_v25 = vpop.eup %2565 }
 0x44e   : > { %v1988_v26 = vsel %vm1978_vm11, %v1976_v15, %v2194_v11  ;;  %v2195_v0 = vadd.f32 -1.0, %v2566_v25 }
 0x44f   : > { %1990 = vst.msk [vmem:[%s376_s11] sm:$0xff] %vm3259_vm10, %v1988_v26 }
 0x450   : > { %v1989_v27 = vsel %vm1979_vm12, %v1977_v18, %v2195_v0 }
 0x451   : > { %1991 = vst.msk [vmem:[%s376_s11 + $0x8] sm:$0xff] %vm3260_vm1, %v1989_v27 }
 0x452   : > { %2580 = shalt.err (!%p2577_p7)
}
 0x453   : > { %s2581_s22 = scalar_lea.hbm %s3156_s29, 256  ;;  %s2585_s11 = scalar_lea.hbm %s3221_s10, 1024 }
 0x454   : > { %p2582_p9 = scmp.ne.s32.totalorder %s3156_s29, %s2581_s22  ;;  %p2586_p12 = scmp.lt.u32.totalorder %s3156_s29, %s3221_s10 }
 0x455   : > { %p2587_p13 = scmp.lt.u32.totalorder %s2585_s11, %s2581_s22  ;;  %p2589_p1 = scmp.lt.u32.totalorder %s2581_s22, %s3156_s29 }
 0x456   : > { %p2583_p10 = pnand %p2582_p9, %p2782_p3 }
 0x457   : > { %p2588_p0 = por %p2587_p13, %p2586_p12 }
 0x458   : > { %p2584_p11 = pneg %p2583_p10 }
 0x459   : > { %p2590_p2 = por %p2589_p1, %p2588_p0 }
 0x45b   : > { %p2591_p4 = pnand %p2590_p2, %p2584_p11 }
 0x45d   : > { %2594 = shalt.err (!%p2591_p4)
}
 0x45e   : > { %s2674_s17 = smov 128   ;;  %s2675_s12 = smov 8  }
 0x45f   : > { %2448 = dma.vmem_to_hbm [thread:$0]  (%p2782_p3), %s3150_s25, 256, %s3156_s29, %s3159_s30, %s2674_s17, %s2674_s17, %s2675_s12  }
 0x460 PF: > { %p2454_p5 = scmp.ge.s32.totalorder %s2661_s20, 2  ;;  %s2023_s21 = sand.u32 1, %s2633_s13  }
 0x461   : > { %s2024_s18 = scalar_lea.sflag [#allocation3], %s2023_s21 }
 0x462   : > { %p2451_p6 = pnand %p2454_p5, %p2791_p8 }
 0x464   : > { %2628 = dma.done.wait (!%p2451_p6), %s2024_s18, 256  }
 0x465   : > { %2630 = vsyncadd (!%p2451_p6), %s2024_s18, 4294967040  ;;  %s23_s20 = sadd.s32 1, %s2661_s20   ;;  %s3261_s19 = sld [smem:[#allocation9_spill]] }
 0x466   : > { %p20_p7 = scmp.ge.s32.totalorder %s23_s20, 6   ;;  %s3262_s16 = sld [smem:[#allocation5_spill]] }
 0x467   : > { %s3263_s17 = sld [smem:[#allocation6_spill]]  ;;  %s3264_s18 = sld [smem:[#allocation7_spill]] }
 0x468   : > { %s3265_s26 = sld [smem:[#allocation8_spill]]  ;;  %s3266_s13 = smov %s2637_s14 }
 0x469   : > { %s3267_s14 = smov %s2641_s15  ;;  %22 = sbr.rel (!%p20_p7) target bundleno = 5 (0x5), region = 111 }
 0x46b   : > { %s3268_s15 = smov %s3261_s19 }
 0x46e   : > { %s3269_s19 = smov %s3265_s26 }
 0x470   :  { %2029 = vsyncpa [#allocation3], 1 }
 0x471   :  { %2031 = vsyncpa [#allocation3 + $0x1], 1 }

</bundles_post_ra>
